<compile_context>
chip_gen: v5e
topology: v5e:2x2
jax: 0.10.0
libtpu: 0.0.40
codegen_flags: <defaults>
</compile_context>

<pallas_src>
import functools

import jax
import jax.numpy as jnp
import numpy as np
from jax import lax
from jax.experimental import pallas as pl
from jax.experimental.pallas import tpu as pltpu


_VMEM = pl.BlockSpec(memory_space=pltpu.MemorySpace.VMEM)


def _round_up(x, m):
    return -(-x // m) * m


def _interp_matrix(out_size, in_size):
    """(out_size, in_size) bilinear interpolation matrix, align_corners=True."""
    if in_size == 1:
        return np.ones((out_size, 1), np.float32)
    m = np.zeros((out_size, in_size), np.float32)
    scale = (in_size - 1) / (out_size - 1)
    for o in range(out_size):
        src = o * scale
        i0 = min(int(np.floor(src)), in_size - 2)
        frac = src - i0
        m[o, i0] += 1.0 - frac
        m[o, i0 + 1] += frac
    return m


def _up_double_conv_kernel(x2_ref, x1_ref, ut_ref, w1_ref, g1_ref, b1_ref,
                           w2_ref, g2_ref, b2_ref, o_ref,
                           xpad_ref, p1_ref, apad_ref, p2_ref,
                           *, n, c1, c2, height, width):
    """Fused upsample(x1) + pad + concat + (conv3x3 + BN + ReLU) x 2.

    Layouts (lane axis = flattened spatial):
      x2_ref   : (N*C2, H*W)        f32   skip connection (rows n-major)
      x1_ref   : (N*C1, Hi*Wi)      f32   low-res features (rows n-major)
      ut_ref   : (Hi*Wi, H*W)       f32   bilinear interpolation operator^T
      w*_ref   : (Cout_p, 9*Cin_p)  bf16  conv weights, tap-major/chan-minor
      g*/b*    : (Cout_p, 1)        f32   BN gamma / beta (0 on padded rows)
      o_ref    : (N*Cout_p, H*W)    f32
      xpad/apad: (C_p, N*HWp)       f32   per-image flat-halo padded acts
      p1/p2    : (9*C_p, N*H*W)     bf16  im2col patches, batch on lane axis
    """
    hw = height * width
    wp = width + 1                       # flat halo width on each image side
    hwp = hw + 2 * wp                    # padded flat size per image
    cin = c1 + c2
    cin_p = xpad_ref.shape[0]
    cout_p = apad_ref.shape[0]

    # --- zero only the halo columns; interiors are fully overwritten --------
    for b in range(n):
        xpad_ref[:, b * hwp:b * hwp + wp] = jnp.zeros((cin_p, wp), jnp.float32)
        xpad_ref[:, b * hwp + wp + hw:(b + 1) * hwp] = jnp.zeros(
            (cin_p, wp), jnp.float32)
        apad_ref[:, b * hwp:b * hwp + wp] = jnp.zeros((cout_p, wp), jnp.float32)
        apad_ref[:, b * hwp + wp + hw:(b + 1) * hwp] = jnp.zeros(
            (cout_p, wp), jnp.float32)
    if cin_p > cin:                      # alignment-pad channels must be zero
        xpad_ref[cin:cin_p, :] = jnp.zeros((cin_p - cin, n * hwp), jnp.float32)

    # --- fused channel concat: torch.cat([x2, x1u], dim=1) ------------------
    for b in range(n):
        xpad_ref[0:c2, b * hwp + wp:b * hwp + wp + hw] = \
            x2_ref[b * c2:(b + 1) * c2, :]

    # --- fused bilinear x2 upsample (align_corners=True) --------------------
    # One batched interpolation matmul for the whole (N, C1) batch; the
    # lane-dense result goes straight into the padded-concat scratch.
    # TODO(synk): this dense (Hi*Wi, Ho*Wo) operator is quadratic in spatial
    # size; switch to the separable row/column form once gridded.
    x1u = jnp.dot(x1_ref[...], ut_ref[...], preferred_element_type=jnp.float32)
    for b in range(n):
        xpad_ref[c2:c2 + c1, b * hwp + wp:b * hwp + wp + hw] = \
            x1u[b * c1:(b + 1) * c1, :]

    # --- one (3x3 conv, pad=1) + BatchNorm2d(batch stats) + ReLU stage ------
    def stage(src_ref, p_ref, wmat, gamma, beta):
        cp = src_ref.shape[0]            # (padded) input-channel count
        # column index -> w coordinate, to mask row wrap of the dx=+-1 taps
        w_idx = lax.broadcasted_iota(jnp.int32, (1, hw), 1) % width
        t = 0
        for dy in (-1, 0, 1):
            for dx in (-1, 0, 1):
                start = wp + dy * width + dx
                for b in range(n):
                    tap = src_ref[:, b * hwp + start:b * hwp + start + hw]
                    if dx == -1:
                        tap = jnp.where(w_idx >= 1, tap, 0.0)
                    elif dx == 1:
                        tap = jnp.where(w_idx <= width - 2, tap, 0.0)
                    p_ref[t * cp:(t + 1) * cp, b * hw:(b + 1) * hw] = \
                        tap.astype(jnp.bfloat16)
                t += 1
        # Single lane-dense MXU matmul per stage: (Cout_p, 9*Cp) @ (9*Cp, N*HW)
        # with bf16 operands and f32 accumulation.
        y = jnp.dot(wmat, p_ref[...], preferred_element_type=jnp.float32)
        # Training-mode batch statistics over (N, H, W), biased variance,
        # eps=1e-5.  Single-pass sums; variance clamped >= 0 (cancellation).
        cnt = float(n * hw)
        mean = jnp.sum(y, axis=1, keepdims=True) / cnt
        var = jnp.sum(y * y, axis=1, keepdims=True) / cnt - mean * mean
        inv = lax.rsqrt(jnp.maximum(var, 0.0) + 1e-5)
        scale = inv * gamma
        shift = beta - mean * scale
        return jnp.maximum(y * scale + shift, 0.0)

    a1 = stage(xpad_ref, p1_ref, w1_ref[...], g1_ref[...], b1_ref[...])

    # Intermediate activation never leaves VMEM: re-pad into a second scratch.
    for b in range(n):
        apad_ref[:, b * hwp + wp:b * hwp + wp + hw] = a1[:, b * hw:(b + 1) * hw]

    a2 = stage(apad_ref, p2_ref, w2_ref[...], g2_ref[...], b2_ref[...])

    # Lane-dense, sublane-aligned output store (rows n-major, channel-minor).
    for b in range(n):
        o_ref[b * cout_p:(b + 1) * cout_p, :] = a2[:, b * hw:(b + 1) * hw]


# --------------------------------------------------------------------------
# `up` module forward
# --------------------------------------------------------------------------

def init_up_params(key, in_ch, out_ch):
    k1, k2 = jax.random.split(key, 2)
    # Conv biases are intentionally not modeled: with BatchNorm2d
    # (training-mode batch stats) right after each conv, a per-channel bias
    # cancels exactly in (x - mean).
    return {
        "w1": jax.random.normal(k1, (out_ch, in_ch, 3, 3), jnp.float32) * 0.1,
        "w2": jax.random.normal(k2, (out_ch, out_ch, 3, 3), jnp.float32) * 0.1,
        "g1": jnp.ones((out_ch,), jnp.float32),    # BN gamma (PyTorch default)
        "be1": jnp.zeros((out_ch,), jnp.float32),  # BN beta
        "g2": jnp.ones((out_ch,), jnp.float32),
        "be2": jnp.zeros((out_ch,), jnp.float32),
    }


def up_forward(x1, x2, params):
    """Forward of `up` (bilinear=True). x1, x2 and the output are NCHW f32."""
    n, c1, hi, wi = x1.shape
    _, c2, h2, w2 = x2.shape
    ho, wo = 2 * hi, 2 * wi

    # Faithful reproduction of the source's F.pad arithmetic (it pads x2; the
    # H-size diff drives the W padding and vice versa).  For an exact x2
    # upsample all diffs are 0 and this is a no-op.
    diff_x = ho - h2
    diff_y = wo - w2
    pad_w = ((diff_x + 1) // 2, int(diff_x / 2))
    pad_h = ((diff_y + 1) // 2, int(diff_y / 2))
    if any(p != 0 for p in pad_w + pad_h):
        x2 = lax.pad(x2, jnp.float32(0.0),
                     [(0, 0, 0), (0, 0, 0),
                      (pad_h[0], pad_h[1], 0), (pad_w[0], pad_w[1], 0)])
    assert x2.shape[2] == ho and x2.shape[3] == wo, (x2.shape, ho, wo)

    hw = ho * wo
    hwp = hw + 2 * (wo + 1)
    cin = c1 + c2
    cout = params["w1"].shape[0]
    cin_p = _round_up(cin, 8)            # sublane-aligned per-tap channel block
    cout_p = _round_up(cout, 8)          # sublane-aligned output channels

    # Bilinear x2 interpolation operator (align_corners=True), transposed so a
    # single (N*C1, Hi*Wi) @ (Hi*Wi, Ho*Wo) matmul upsamples the whole batch.
    ut = jnp.asarray(np.kron(_interp_matrix(ho, hi), _interp_matrix(wo, wi)).T)

    # (Cout, Cin, 3, 3) -> (Cout_p, 9*Cin_p) bf16, zero-padded for sublane
    # alignment; column order (ky, kx, ci) with ci fastest, matching the
    # im2col row order (x2 channels first, then x1 channels).
    def pack_w(w, ci, ci_p):
        co = w.shape[0]
        wt = jnp.transpose(w, (0, 2, 3, 1))                    # (co, 3, 3, ci)
        buf = jnp.zeros((cout_p, 3, 3, ci_p), jnp.float32)
        buf = buf.at[:co, :, :, :ci].set(wt)
        return buf.reshape(cout_p, 9 * ci_p).astype(jnp.bfloat16)

    def pack_bn(v):                      # padded channels get gamma = beta = 0
        return jnp.zeros((cout_p, 1), jnp.float32).at[:cout, 0].set(v)

    kernel = functools.partial(_up_double_conv_kernel, n=n, c1=c1, c2=c2,
                               height=ho, width=wo)
    out = pl.pallas_call(
        kernel,
        out_shape=jax.ShapeDtypeStruct((n * cout_p, hw), jnp.float32),
        in_specs=[_VMEM] * 9,
        out_specs=_VMEM,
        scratch_shapes=[
            pltpu.VMEM((cin_p, n * hwp), jnp.float32),        # padded concat
            pltpu.VMEM((9 * cin_p, n * hw), jnp.bfloat16),    # im2col stage 1
            pltpu.VMEM((cout_p, n * hwp), jnp.float32),       # padded act
            pltpu.VMEM((9 * cout_p, n * hw), jnp.bfloat16),   # im2col stage 2
        ],
    )(x2.reshape(n * c2, hw), x1.reshape(n * c1, hi * wi), ut,
      pack_w(params["w1"], cin, cin_p), pack_bn(params["g1"]),
      pack_bn(params["be1"]),
      pack_w(params["w2"], cout, cout_p), pack_bn(params["g2"]),
      pack_bn(params["be2"]))

    # Free contiguous reshape back to NCHW; drop the alignment-pad channels.
    return out.reshape(n, cout_p, ho, wo)[:, :cout]


# --------------------------------------------------------------------------

if __name__ == "__main__":
    key = jax.random.PRNGKey(0)
    kx1, kx2, kp = jax.random.split(key, 3)

    in_ch, out_ch = 8, 4  # concat of 4 + 4 channels -> double_conv(8, 4)
    x1 = jax.random.normal(kx1, (2, 4, 8, 8), jnp.float32)    # low-res features
    x2 = jax.random.normal(kx2, (2, 4, 16, 16), jnp.float32)  # skip connection

    params = init_up_params(kp, in_ch, out_ch)

    out = jax.block_until_ready(up_forward(x1, x2, params))
    assert out.shape == (2, out_ch, 16, 16), out.shape
    assert bool(jnp.all(jnp.isfinite(out)))
    print("KERNEL_OK")
</pallas_src>

<mosaic_0001>
module attributes {stable_mosaic.version = 11 : i64} {
  func.func @_up_double_conv_kernel(%arg0: memref<8x256xf32, #tpu.memory_space<vmem>>, %arg1: memref<8x64xf32, #tpu.memory_space<vmem>>, %arg2: memref<64x256xf32, #tpu.memory_space<vmem>>, %arg3: memref<8x72xbf16, #tpu.memory_space<vmem>>, %arg4: memref<8x1xf32, #tpu.memory_space<vmem>>, %arg5: memref<8x1xf32, #tpu.memory_space<vmem>>, %arg6: memref<8x72xbf16, #tpu.memory_space<vmem>>, %arg7: memref<8x1xf32, #tpu.memory_space<vmem>>, %arg8: memref<8x1xf32, #tpu.memory_space<vmem>>, %arg9: memref<16x256xf32, #tpu.memory_space<vmem>>, %arg10: memref<8x580xf32, #tpu.memory_space<vmem>>, %arg11: memref<72x512xbf16, #tpu.memory_space<vmem>>, %arg12: memref<8x580xf32, #tpu.memory_space<vmem>>, %arg13: memref<72x512xbf16, #tpu.memory_space<vmem>>) attributes {dimension_semantics = [], scalar_prefetch = 0 : i64, scratch_operands = 4 : i64, tpu.core_type = #tpu.core_type<tc>} {
    %cst = arith.constant 0.000000e+00 : f32
    %0 = vector.broadcast %cst : f32 to vector<8x17xf32>
    %c0 = arith.constant 0 : index
    %c0_0 = arith.constant 0 : index
    %1 = vector.load %arg10[%c0, %c0_0] : memref<8x580xf32, #tpu.memory_space<vmem>>, vector<8x17xf32>
    tpu.vector_store %arg10[%c0, %c0_0], %0 {strides = array<i32>} : memref<8x580xf32, #tpu.memory_space<vmem>>, vector<8x17xf32>,
    %cst_1 = arith.constant 0.000000e+00 : f32
    %2 = vector.broadcast %cst_1 : f32 to vector<8x17xf32>
    %c0_2 = arith.constant 0 : index
    %c273 = arith.constant 273 : index
    %3 = vector.load %arg10[%c0_2, %c273] : memref<8x580xf32, #tpu.memory_space<vmem>>, vector<8x17xf32>
    tpu.vector_store %arg10[%c0_2, %c273], %2 {strides = array<i32>} : memref<8x580xf32, #tpu.memory_space<vmem>>, vector<8x17xf32>,
    %cst_3 = arith.constant 0.000000e+00 : f32
    %4 = vector.broadcast %cst_3 : f32 to vector<8x17xf32>
    %c0_4 = arith.constant 0 : index
    %c0_5 = arith.constant 0 : index
    %5 = vector.load %arg12[%c0_4, %c0_5] : memref<8x580xf32, #tpu.memory_space<vmem>>, vector<8x17xf32>
    tpu.vector_store %arg12[%c0_4, %c0_5], %4 {strides = array<i32>} : memref<8x580xf32, #tpu.memory_space<vmem>>, vector<8x17xf32>,
    %cst_6 = arith.constant 0.000000e+00 : f32
    %6 = vector.broadcast %cst_6 : f32 to vector<8x17xf32>
    %c0_7 = arith.constant 0 : index
    %c273_8 = arith.constant 273 : index
    %7 = vector.load %arg12[%c0_7, %c273_8] : memref<8x580xf32, #tpu.memory_space<vmem>>, vector<8x17xf32>
    tpu.vector_store %arg12[%c0_7, %c273_8], %6 {strides = array<i32>} : memref<8x580xf32, #tpu.memory_space<vmem>>, vector<8x17xf32>,
    %cst_9 = arith.constant 0.000000e+00 : f32
    %8 = vector.broadcast %cst_9 : f32 to vector<8x17xf32>
    %c0_10 = arith.constant 0 : index
    %c290 = arith.constant 290 : index
    %9 = vector.load %arg10[%c0_10, %c290] : memref<8x580xf32, #tpu.memory_space<vmem>>, vector<8x17xf32>
    tpu.vector_store %arg10[%c0_10, %c290], %8 {strides = array<i32>} : memref<8x580xf32, #tpu.memory_space<vmem>>, vector<8x17xf32>,
    %cst_11 = arith.constant 0.000000e+00 : f32
    %10 = vector.broadcast %cst_11 : f32 to vector<8x17xf32>
    %c0_12 = arith.constant 0 : index
    %c563 = arith.constant 563 : index
    %11 = vector.load %arg10[%c0_12, %c563] : memref<8x580xf32, #tpu.memory_space<vmem>>, vector<8x17xf32>
    tpu.vector_store %arg10[%c0_12, %c563], %10 {strides = array<i32>} : memref<8x580xf32, #tpu.memory_space<vmem>>, vector<8x17xf32>,
    %cst_13 = arith.constant 0.000000e+00 : f32
    %12 = vector.broadcast %cst_13 : f32 to vector<8x17xf32>
    %c0_14 = arith.constant 0 : index
    %c290_15 = arith.constant 290 : index
    %13 = vector.load %arg12[%c0_14, %c290_15] : memref<8x580xf32, #tpu.memory_space<vmem>>, vector<8x17xf32>
    tpu.vector_store %arg12[%c0_14, %c290_15], %12 {strides = array<i32>} : memref<8x580xf32, #tpu.memory_space<vmem>>, vector<8x17xf32>,
    %cst_16 = arith.constant 0.000000e+00 : f32
    %14 = vector.broadcast %cst_16 : f32 to vector<8x17xf32>
    %c0_17 = arith.constant 0 : index
    %c563_18 = arith.constant 563 : index
    %15 = vector.load %arg12[%c0_17, %c563_18] : memref<8x580xf32, #tpu.memory_space<vmem>>, vector<8x17xf32>
    tpu.vector_store %arg12[%c0_17, %c563_18], %14 {strides = array<i32>} : memref<8x580xf32, #tpu.memory_space<vmem>>, vector<8x17xf32>,
    %c0_19 = arith.constant 0 : index
    %c0_20 = arith.constant 0 : index
    %16 = vector.load %arg0[%c0_19, %c0_20] : memref<8x256xf32, #tpu.memory_space<vmem>>, vector<4x256xf32>
    %c0_21 = arith.constant 0 : index
    %c17 = arith.constant 17 : index
    %17 = vector.load %arg10[%c0_21, %c17] : memref<8x580xf32, #tpu.memory_space<vmem>>, vector<4x256xf32>
    tpu.vector_store %arg10[%c0_21, %c17], %16 {strides = array<i32>} : memref<8x580xf32, #tpu.memory_space<vmem>>, vector<4x256xf32>,
    %c4 = arith.constant 4 : index
    %c0_22 = arith.constant 0 : index
    %18 = vector.load %arg0[%c4, %c0_22] : memref<8x256xf32, #tpu.memory_space<vmem>>, vector<4x256xf32>
    %c0_23 = arith.constant 0 : index
    %c307 = arith.constant 307 : index
    %19 = vector.load %arg10[%c0_23, %c307] : memref<8x580xf32, #tpu.memory_space<vmem>>, vector<4x256xf32>
    tpu.vector_store %arg10[%c0_23, %c307], %18 {strides = array<i32>} : memref<8x580xf32, #tpu.memory_space<vmem>>, vector<4x256xf32>,
    %c0_24 = arith.constant 0 : index
    %c0_25 = arith.constant 0 : index
    %20 = vector.load %arg1[%c0_24, %c0_25] : memref<8x64xf32, #tpu.memory_space<vmem>>, vector<8x64xf32>
    %c0_26 = arith.constant 0 : index
    %c0_27 = arith.constant 0 : index
    %21 = vector.load %arg2[%c0_26, %c0_27] : memref<64x256xf32, #tpu.memory_space<vmem>>, vector<64x256xf32>
    %cst_28 = arith.constant dense<0.000000e+00> : vector<8x256xf32>
    %22 = tpu.matmul %20, %21, %cst_28 {dimension_numbers = #tpu.dot_dimension_numbers<[1], [0], [0], [1], [0, 0, 1, 1], [], []>} : vector<8x64xf32>, vector<64x256xf32>, vector<8x256xf32> -> vector<8x256xf32>
    %23 = vector.extract_strided_slice %22 {offsets = [0, 0], sizes = [4, 256], strides = [1, 1]} : vector<8x256xf32> to vector<4x256xf32>
    %c4_29 = arith.constant 4 : index
    %c17_30 = arith.constant 17 : index
    %24 = vector.load %arg10[%c4_29, %c17_30] : memref<8x580xf32, #tpu.memory_space<vmem>>, vector<4x256xf32>
    tpu.vector_store %arg10[%c4_29, %c17_30], %23 {strides = array<i32>} : memref<8x580xf32, #tpu.memory_space<vmem>>, vector<4x256xf32>,
    %25 = vector.extract_strided_slice %22 {offsets = [4, 0], sizes = [4, 256], strides = [1, 1]} : vector<8x256xf32> to vector<4x256xf32>
    %c4_31 = arith.constant 4 : index
    %c307_32 = arith.constant 307 : index
    %26 = vector.load %arg10[%c4_31, %c307_32] : memref<8x580xf32, #tpu.memory_space<vmem>>, vector<4x256xf32>
    tpu.vector_store %arg10[%c4_31, %c307_32], %25 {strides = array<i32>} : memref<8x580xf32, #tpu.memory_space<vmem>>, vector<4x256xf32>,
    %c0_33 = arith.constant 0 : index
    %c0_34 = arith.constant 0 : index
    %27 = vector.load %arg3[%c0_33, %c0_34] : memref<8x72xbf16, #tpu.memory_space<vmem>>, vector<8x72xbf16>
    %c0_35 = arith.constant 0 : index
    %c0_36 = arith.constant 0 : index
    %28 = vector.load %arg4[%c0_35, %c0_36] : memref<8x1xf32, #tpu.memory_space<vmem>>, vector<8x1xf32>
    %c0_37 = arith.constant 0 : index
    %c0_38 = arith.constant 0 : index
    %29 = vector.load %arg5[%c0_37, %c0_38] : memref<8x1xf32, #tpu.memory_space<vmem>>, vector<8x1xf32>
    %30 = tpu.iota {dimensions = array<i32: 1>} : vector<1x256xi32>
    %c16_i32 = arith.constant 16 : i32
    %c0_i32 = arith.constant 0 : i32
    %31 = arith.cmpi eq, %c16_i32, %c0_i32 : i32
    %c1_i32 = arith.constant 1 : i32
    %32 = arith.select %31, %c1_i32, %c16_i32 : i32
    %33 = vector.broadcast %32 : i32 to vector<1x256xi32>
    %34 = arith.remsi %30, %33 : vector<1x256xi32>
    %c0_i32_39 = arith.constant 0 : i32
    %35 = vector.broadcast %c0_i32_39 : i32 to vector<1x256xi32>
    %36 = arith.cmpi ne, %34, %35 : vector<1x256xi32>
    %c0_i32_40 = arith.constant 0 : i32
    %37 = vector.broadcast %c0_i32_40 : i32 to vector<1x256xi32>
    %38 = arith.cmpi slt, %34, %37 : vector<1x256xi32>
    %c0_i32_41 = arith.constant 0 : i32
    %39 = arith.cmpi slt, %32, %c0_i32_41 : i32
    %40 = vector.broadcast %39 : i1 to vector<1x256xi1>
    %41 = vector.broadcast %40 : vector<1x256xi1> to vector<1x256xi1>
    %42 = arith.xori %38, %41 : vector<1x256xi1>
    %43 = arith.andi %42, %36 : vector<1x256xi1>
    %44 = vector.broadcast %32 : i32 to vector<1x256xi32>
    %45 = arith.addi %34, %44 : vector<1x256xi32>
    %46 = arith.select %43, %45, %34 : vector<1x256xi1>, vector<1x256xi32>
    %c0_42 = arith.constant 0 : index
    %c0_43 = arith.constant 0 : index
    %47 = vector.load %arg10[%c0_42, %c0_43] : memref<8x580xf32, #tpu.memory_space<vmem>>, vector<8x256xf32>
    %c1_i32_44 = arith.constant 1 : i32
    %48 = vector.broadcast %c1_i32_44 : i32 to vector<1x256xi32>
    %49 = arith.cmpi sge, %46, %48 : vector<1x256xi32>
    %cst_45 = arith.constant 0.000000e+00 : f32
    %50 = vector.shape_cast %49 : vector<1x256xi1> to vector<1x256xi1>
    %51 = vector.broadcast %50 : vector<1x256xi1> to vector<8x256xi1>
    %52 = vector.broadcast %cst_45 : f32 to vector<8x256xf32>
    %53 = arith.select %51, %47, %52 : vector<8x256xi1>, vector<8x256xf32>
    %54 = arith.truncf %53 : vector<8x256xf32> to vector<8x256xbf16>
    %c0_46 = arith.constant 0 : index
    %c0_47 = arith.constant 0 : index
    %55 = vector.load %arg11[%c0_46, %c0_47] : memref<72x512xbf16, #tpu.memory_space<vmem>>, vector<8x256xbf16>
    tpu.vector_store %arg11[%c0_46, %c0_47], %54 {strides = array<i32>} : memref<72x512xbf16, #tpu.memory_space<vmem>>, vector<8x256xbf16>,
    %c0_48 = arith.constant 0 : index
    %c290_49 = arith.constant 290 : index
    %56 = vector.load %arg10[%c0_48, %c290_49] : memref<8x580xf32, #tpu.memory_space<vmem>>, vector<8x256xf32>
    %c1_i32_50 = arith.constant 1 : i32
    %57 = vector.broadcast %c1_i32_50 : i32 to vector<1x256xi32>
    %58 = arith.cmpi sge, %46, %57 : vector<1x256xi32>
    %cst_51 = arith.constant 0.000000e+00 : f32
    %59 = vector.shape_cast %58 : vector<1x256xi1> to vector<1x256xi1>
    %60 = vector.broadcast %59 : vector<1x256xi1> to vector<8x256xi1>
    %61 = vector.broadcast %cst_51 : f32 to vector<8x256xf32>
    %62 = arith.select %60, %56, %61 : vector<8x256xi1>, vector<8x256xf32>
    %63 = arith.truncf %62 : vector<8x256xf32> to vector<8x256xbf16>
    %c0_52 = arith.constant 0 : index
    %c256 = arith.constant 256 : index
    %64 = vector.load %arg11[%c0_52, %c256] : memref<72x512xbf16, #tpu.memory_space<vmem>>, vector<8x256xbf16>
    tpu.vector_store %arg11[%c0_52, %c256], %63 {strides = array<i32>} : memref<72x512xbf16, #tpu.memory_space<vmem>>, vector<8x256xbf16>,
    %c0_53 = arith.constant 0 : index
    %c1 = arith.constant 1 : index
    %65 = vector.load %arg10[%c0_53, %c1] : memref<8x580xf32, #tpu.memory_space<vmem>>, vector<8x256xf32>
    %66 = arith.truncf %65 : vector<8x256xf32> to vector<8x256xbf16>
    %c8 = arith.constant 8 : index
    %c0_54 = arith.constant 0 : index
    %67 = vector.load %arg11[%c8, %c0_54] : memref<72x512xbf16, #tpu.memory_space<vmem>>, vector<8x256xbf16>
    tpu.vector_store %arg11[%c8, %c0_54], %66 {strides = array<i32>} : memref<72x512xbf16, #tpu.memory_space<vmem>>, vector<8x256xbf16>,
    %c0_55 = arith.constant 0 : index
    %c291 = arith.constant 291 : index
    %68 = vector.load %arg10[%c0_55, %c291] : memref<8x580xf32, #tpu.memory_space<vmem>>, vector<8x256xf32>
    %69 = arith.truncf %68 : vector<8x256xf32> to vector<8x256xbf16>
    %c8_56 = arith.constant 8 : index
    %c256_57 = arith.constant 256 : index
    %70 = vector.load %arg11[%c8_56, %c256_57] : memref<72x512xbf16, #tpu.memory_space<vmem>>, vector<8x256xbf16>
    tpu.vector_store %arg11[%c8_56, %c256_57], %69 {strides = array<i32>} : memref<72x512xbf16, #tpu.memory_space<vmem>>, vector<8x256xbf16>,
    %c0_58 = arith.constant 0 : index
    %c2 = arith.constant 2 : index
    %71 = vector.load %arg10[%c0_58, %c2] : memref<8x580xf32, #tpu.memory_space<vmem>>, vector<8x256xf32>
    %c14_i32 = arith.constant 14 : i32
    %72 = vector.broadcast %c14_i32 : i32 to vector<1x256xi32>
    %73 = arith.cmpi sle, %46, %72 : vector<1x256xi32>
    %cst_59 = arith.constant 0.000000e+00 : f32
    %74 = vector.shape_cast %73 : vector<1x256xi1> to vector<1x256xi1>
    %75 = vector.broadcast %74 : vector<1x256xi1> to vector<8x256xi1>
    %76 = vector.broadcast %cst_59 : f32 to vector<8x256xf32>
    %77 = arith.select %75, %71, %76 : vector<8x256xi1>, vector<8x256xf32>
    %78 = arith.truncf %77 : vector<8x256xf32> to vector<8x256xbf16>
    %c16 = arith.constant 16 : index
    %c0_60 = arith.constant 0 : index
    %79 = vector.load %arg11[%c16, %c0_60] : memref<72x512xbf16, #tpu.memory_space<vmem>>, vector<8x256xbf16>
    tpu.vector_store %arg11[%c16, %c0_60], %78 {strides = array<i32>} : memref<72x512xbf16, #tpu.memory_space<vmem>>, vector<8x256xbf16>,
    %c0_61 = arith.constant 0 : index
    %c292 = arith.constant 292 : index
    %80 = vector.load %arg10[%c0_61, %c292] : memref<8x580xf32, #tpu.memory_space<vmem>>, vector<8x256xf32>
    %c14_i32_62 = arith.constant 14 : i32
    %81 = vector.broadcast %c14_i32_62 : i32 to vector<1x256xi32>
    %82 = arith.cmpi sle, %46, %81 : vector<1x256xi32>
    %cst_63 = arith.constant 0.000000e+00 : f32
    %83 = vector.shape_cast %82 : vector<1x256xi1> to vector<1x256xi1>
    %84 = vector.broadcast %83 : vector<1x256xi1> to vector<8x256xi1>
    %85 = vector.broadcast %cst_63 : f32 to vector<8x256xf32>
    %86 = arith.select %84, %80, %85 : vector<8x256xi1>, vector<8x256xf32>
    %87 = arith.truncf %86 : vector<8x256xf32> to vector<8x256xbf16>
    %c16_64 = arith.constant 16 : index
    %c256_65 = arith.constant 256 : index
    %88 = vector.load %arg11[%c16_64, %c256_65] : memref<72x512xbf16, #tpu.memory_space<vmem>>, vector<8x256xbf16>
    tpu.vector_store %arg11[%c16_64, %c256_65], %87 {strides = array<i32>} : memref<72x512xbf16, #tpu.memory_space<vmem>>, vector<8x256xbf16>,
    %c0_66 = arith.constant 0 : index
    %c16_67 = arith.constant 16 : index
    %89 = vector.load %arg10[%c0_66, %c16_67] : memref<8x580xf32, #tpu.memory_space<vmem>>, vector<8x256xf32>
    %c1_i32_68 = arith.constant 1 : i32
    %90 = vector.broadcast %c1_i32_68 : i32 to vector<1x256xi32>
    %91 = arith.cmpi sge, %46, %90 : vector<1x256xi32>
    %cst_69 = arith.constant 0.000000e+00 : f32
    %92 = vector.shape_cast %91 : vector<1x256xi1> to vector<1x256xi1>
    %93 = vector.broadcast %92 : vector<1x256xi1> to vector<8x256xi1>
    %94 = vector.broadcast %cst_69 : f32 to vector<8x256xf32>
    %95 = arith.select %93, %89, %94 : vector<8x256xi1>, vector<8x256xf32>
    %96 = arith.truncf %95 : vector<8x256xf32> to vector<8x256xbf16>
    %c24 = arith.constant 24 : index
    %c0_70 = arith.constant 0 : index
    %97 = vector.load %arg11[%c24, %c0_70] : memref<72x512xbf16, #tpu.memory_space<vmem>>, vector<8x256xbf16>
    tpu.vector_store %arg11[%c24, %c0_70], %96 {strides = array<i32>} : memref<72x512xbf16, #tpu.memory_space<vmem>>, vector<8x256xbf16>,
    %c0_71 = arith.constant 0 : index
    %c306 = arith.constant 306 : index
    %98 = vector.load %arg10[%c0_71, %c306] : memref<8x580xf32, #tpu.memory_space<vmem>>, vector<8x256xf32>
    %c1_i32_72 = arith.constant 1 : i32
    %99 = vector.broadcast %c1_i32_72 : i32 to vector<1x256xi32>
    %100 = arith.cmpi sge, %46, %99 : vector<1x256xi32>
    %cst_73 = arith.constant 0.000000e+00 : f32
    %101 = vector.shape_cast %100 : vector<1x256xi1> to vector<1x256xi1>
    %102 = vector.broadcast %101 : vector<1x256xi1> to vector<8x256xi1>
    %103 = vector.broadcast %cst_73 : f32 to vector<8x256xf32>
    %104 = arith.select %102, %98, %103 : vector<8x256xi1>, vector<8x256xf32>
    %105 = arith.truncf %104 : vector<8x256xf32> to vector<8x256xbf16>
    %c24_74 = arith.constant 24 : index
    %c256_75 = arith.constant 256 : index
    %106 = vector.load %arg11[%c24_74, %c256_75] : memref<72x512xbf16, #tpu.memory_space<vmem>>, vector<8x256xbf16>
    tpu.vector_store %arg11[%c24_74, %c256_75], %105 {strides = array<i32>} : memref<72x512xbf16, #tpu.memory_space<vmem>>, vector<8x256xbf16>,
    %c0_76 = arith.constant 0 : index
    %c17_77 = arith.constant 17 : index
    %107 = vector.load %arg10[%c0_76, %c17_77] : memref<8x580xf32, #tpu.memory_space<vmem>>, vector<8x256xf32>
    %108 = arith.truncf %107 : vector<8x256xf32> to vector<8x256xbf16>
    %c32 = arith.constant 32 : index
    %c0_78 = arith.constant 0 : index
    %109 = vector.load %arg11[%c32, %c0_78] : memref<72x512xbf16, #tpu.memory_space<vmem>>, vector<8x256xbf16>
    tpu.vector_store %arg11[%c32, %c0_78], %108 {strides = array<i32>} : memref<72x512xbf16, #tpu.memory_space<vmem>>, vector<8x256xbf16>,
    %c0_79 = arith.constant 0 : index
    %c307_80 = arith.constant 307 : index
    %110 = vector.load %arg10[%c0_79, %c307_80] : memref<8x580xf32, #tpu.memory_space<vmem>>, vector<8x256xf32>
    %111 = arith.truncf %110 : vector<8x256xf32> to vector<8x256xbf16>
    %c32_81 = arith.constant 32 : index
    %c256_82 = arith.constant 256 : index
    %112 = vector.load %arg11[%c32_81, %c256_82] : memref<72x512xbf16, #tpu.memory_space<vmem>>, vector<8x256xbf16>
    tpu.vector_store %arg11[%c32_81, %c256_82], %111 {strides = array<i32>} : memref<72x512xbf16, #tpu.memory_space<vmem>>, vector<8x256xbf16>,
    %c0_83 = arith.constant 0 : index
    %c18 = arith.constant 18 : index
    %113 = vector.load %arg10[%c0_83, %c18] : memref<8x580xf32, #tpu.memory_space<vmem>>, vector<8x256xf32>
    %c14_i32_84 = arith.constant 14 : i32
    %114 = vector.broadcast %c14_i32_84 : i32 to vector<1x256xi32>
    %115 = arith.cmpi sle, %46, %114 : vector<1x256xi32>
    %cst_85 = arith.constant 0.000000e+00 : f32
    %116 = vector.shape_cast %115 : vector<1x256xi1> to vector<1x256xi1>
    %117 = vector.broadcast %116 : vector<1x256xi1> to vector<8x256xi1>
    %118 = vector.broadcast %cst_85 : f32 to vector<8x256xf32>
    %119 = arith.select %117, %113, %118 : vector<8x256xi1>, vector<8x256xf32>
    %120 = arith.truncf %119 : vector<8x256xf32> to vector<8x256xbf16>
    %c40 = arith.constant 40 : index
    %c0_86 = arith.constant 0 : index
    %121 = vector.load %arg11[%c40, %c0_86] : memref<72x512xbf16, #tpu.memory_space<vmem>>, vector<8x256xbf16>
    tpu.vector_store %arg11[%c40, %c0_86], %120 {strides = array<i32>} : memref<72x512xbf16, #tpu.memory_space<vmem>>, vector<8x256xbf16>,
    %c0_87 = arith.constant 0 : index
    %c308 = arith.constant 308 : index
    %122 = vector.load %arg10[%c0_87, %c308] : memref<8x580xf32, #tpu.memory_space<vmem>>, vector<8x256xf32>
    %c14_i32_88 = arith.constant 14 : i32
    %123 = vector.broadcast %c14_i32_88 : i32 to vector<1x256xi32>
    %124 = arith.cmpi sle, %46, %123 : vector<1x256xi32>
    %cst_89 = arith.constant 0.000000e+00 : f32
    %125 = vector.shape_cast %124 : vector<1x256xi1> to vector<1x256xi1>
    %126 = vector.broadcast %125 : vector<1x256xi1> to vector<8x256xi1>
    %127 = vector.broadcast %cst_89 : f32 to vector<8x256xf32>
    %128 = arith.select %126, %122, %127 : vector<8x256xi1>, vector<8x256xf32>
    %129 = arith.truncf %128 : vector<8x256xf32> to vector<8x256xbf16>
    %c40_90 = arith.constant 40 : index
    %c256_91 = arith.constant 256 : index
    %130 = vector.load %arg11[%c40_90, %c256_91] : memref<72x512xbf16, #tpu.memory_space<vmem>>, vector<8x256xbf16>
    tpu.vector_store %arg11[%c40_90, %c256_91], %129 {strides = array<i32>} : memref<72x512xbf16, #tpu.memory_space<vmem>>, vector<8x256xbf16>,
    %c0_92 = arith.constant 0 : index
    %c32_93 = arith.constant 32 : index
    %131 = vector.load %arg10[%c0_92, %c32_93] : memref<8x580xf32, #tpu.memory_space<vmem>>, vector<8x256xf32>
    %c1_i32_94 = arith.constant 1 : i32
    %132 = vector.broadcast %c1_i32_94 : i32 to vector<1x256xi32>
    %133 = arith.cmpi sge, %46, %132 : vector<1x256xi32>
    %cst_95 = arith.constant 0.000000e+00 : f32
    %134 = vector.shape_cast %133 : vector<1x256xi1> to vector<1x256xi1>
    %135 = vector.broadcast %134 : vector<1x256xi1> to vector<8x256xi1>
    %136 = vector.broadcast %cst_95 : f32 to vector<8x256xf32>
    %137 = arith.select %135, %131, %136 : vector<8x256xi1>, vector<8x256xf32>
    %138 = arith.truncf %137 : vector<8x256xf32> to vector<8x256xbf16>
    %c48 = arith.constant 48 : index
    %c0_96 = arith.constant 0 : index
    %139 = vector.load %arg11[%c48, %c0_96] : memref<72x512xbf16, #tpu.memory_space<vmem>>, vector<8x256xbf16>
    tpu.vector_store %arg11[%c48, %c0_96], %138 {strides = array<i32>} : memref<72x512xbf16, #tpu.memory_space<vmem>>, vector<8x256xbf16>,
    %c0_97 = arith.constant 0 : index
    %c322 = arith.constant 322 : index
    %140 = vector.load %arg10[%c0_97, %c322] : memref<8x580xf32, #tpu.memory_space<vmem>>, vector<8x256xf32>
    %c1_i32_98 = arith.constant 1 : i32
    %141 = vector.broadcast %c1_i32_98 : i32 to vector<1x256xi32>
    %142 = arith.cmpi sge, %46, %141 : vector<1x256xi32>
    %cst_99 = arith.constant 0.000000e+00 : f32
    %143 = vector.shape_cast %142 : vector<1x256xi1> to vector<1x256xi1>
    %144 = vector.broadcast %143 : vector<1x256xi1> to vector<8x256xi1>
    %145 = vector.broadcast %cst_99 : f32 to vector<8x256xf32>
    %146 = arith.select %144, %140, %145 : vector<8x256xi1>, vector<8x256xf32>
    %147 = arith.truncf %146 : vector<8x256xf32> to vector<8x256xbf16>
    %c48_100 = arith.constant 48 : index
    %c256_101 = arith.constant 256 : index
    %148 = vector.load %arg11[%c48_100, %c256_101] : memref<72x512xbf16, #tpu.memory_space<vmem>>, vector<8x256xbf16>
    tpu.vector_store %arg11[%c48_100, %c256_101], %147 {strides = array<i32>} : memref<72x512xbf16, #tpu.memory_space<vmem>>, vector<8x256xbf16>,
    %c0_102 = arith.constant 0 : index
    %c33 = arith.constant 33 : index
    %149 = vector.load %arg10[%c0_102, %c33] : memref<8x580xf32, #tpu.memory_space<vmem>>, vector<8x256xf32>
    %150 = arith.truncf %149 : vector<8x256xf32> to vector<8x256xbf16>
    %c56 = arith.constant 56 : index
    %c0_103 = arith.constant 0 : index
    %151 = vector.load %arg11[%c56, %c0_103] : memref<72x512xbf16, #tpu.memory_space<vmem>>, vector<8x256xbf16>
    tpu.vector_store %arg11[%c56, %c0_103], %150 {strides = array<i32>} : memref<72x512xbf16, #tpu.memory_space<vmem>>, vector<8x256xbf16>,
    %c0_104 = arith.constant 0 : index
    %c323 = arith.constant 323 : index
    %152 = vector.load %arg10[%c0_104, %c323] : memref<8x580xf32, #tpu.memory_space<vmem>>, vector<8x256xf32>
    %153 = arith.truncf %152 : vector<8x256xf32> to vector<8x256xbf16>
    %c56_105 = arith.constant 56 : index
    %c256_106 = arith.constant 256 : index
    %154 = vector.load %arg11[%c56_105, %c256_106] : memref<72x512xbf16, #tpu.memory_space<vmem>>, vector<8x256xbf16>
    tpu.vector_store %arg11[%c56_105, %c256_106], %153 {strides = array<i32>} : memref<72x512xbf16, #tpu.memory_space<vmem>>, vector<8x256xbf16>,
    %c0_107 = arith.constant 0 : index
    %c34 = arith.constant 34 : index
    %155 = vector.load %arg10[%c0_107, %c34] : memref<8x580xf32, #tpu.memory_space<vmem>>, vector<8x256xf32>
    %c14_i32_108 = arith.constant 14 : i32
    %156 = vector.broadcast %c14_i32_108 : i32 to vector<1x256xi32>
    %157 = arith.cmpi sle, %46, %156 : vector<1x256xi32>
    %cst_109 = arith.constant 0.000000e+00 : f32
    %158 = vector.shape_cast %157 : vector<1x256xi1> to vector<1x256xi1>
    %159 = vector.broadcast %158 : vector<1x256xi1> to vector<8x256xi1>
    %160 = vector.broadcast %cst_109 : f32 to vector<8x256xf32>
    %161 = arith.select %159, %155, %160 : vector<8x256xi1>, vector<8x256xf32>
    %162 = arith.truncf %161 : vector<8x256xf32> to vector<8x256xbf16>
    %c64 = arith.constant 64 : index
    %c0_110 = arith.constant 0 : index
    %163 = vector.load %arg11[%c64, %c0_110] : memref<72x512xbf16, #tpu.memory_space<vmem>>, vector<8x256xbf16>
    tpu.vector_store %arg11[%c64, %c0_110], %162 {strides = array<i32>} : memref<72x512xbf16, #tpu.memory_space<vmem>>, vector<8x256xbf16>,
    %c0_111 = arith.constant 0 : index
    %c324 = arith.constant 324 : index
    %164 = vector.load %arg10[%c0_111, %c324] : memref<8x580xf32, #tpu.memory_space<vmem>>, vector<8x256xf32>
    %c14_i32_112 = arith.constant 14 : i32
    %165 = vector.broadcast %c14_i32_112 : i32 to vector<1x256xi32>
    %166 = arith.cmpi sle, %46, %165 : vector<1x256xi32>
    %cst_113 = arith.constant 0.000000e+00 : f32
    %167 = vector.shape_cast %166 : vector<1x256xi1> to vector<1x256xi1>
    %168 = vector.broadcast %167 : vector<1x256xi1> to vector<8x256xi1>
    %169 = vector.broadcast %cst_113 : f32 to vector<8x256xf32>
    %170 = arith.select %168, %164, %169 : vector<8x256xi1>, vector<8x256xf32>
    %171 = arith.truncf %170 : vector<8x256xf32> to vector<8x256xbf16>
    %c64_114 = arith.constant 64 : index
    %c256_115 = arith.constant 256 : index
    %172 = vector.load %arg11[%c64_114, %c256_115] : memref<72x512xbf16, #tpu.memory_space<vmem>>, vector<8x256xbf16>
    tpu.vector_store %arg11[%c64_114, %c256_115], %171 {strides = array<i32>} : memref<72x512xbf16, #tpu.memory_space<vmem>>, vector<8x256xbf16>,
    %c0_116 = arith.constant 0 : index
    %c0_117 = arith.constant 0 : index
    %173 = vector.load %arg11[%c0_116, %c0_117] : memref<72x512xbf16, #tpu.memory_space<vmem>>, vector<72x512xbf16>
    %cst_118 = arith.constant dense<0.000000e+00> : vector<8x512xf32>
    %174 = tpu.matmul %27, %173, %cst_118 {dimension_numbers = #tpu.dot_dimension_numbers<[1], [0], [0], [1], [0, 0, 1, 1], [], []>} : vector<8x72xbf16>, vector<72x512xbf16>, vector<8x512xf32> -> vector<8x512xf32>
    %cst_119 = arith.constant dense<0.000000e+00> : vector<8xf32>
    %175 = vector.multi_reduction <add>, %174, %cst_119 [1] : vector<8x512xf32> to vector<8xf32>
    %176 = vector.shape_cast %175 : vector<8xf32> to vector<8x1xf32>
    %cst_120 = arith.constant 5.120000e+02 : f32
    %177 = vector.broadcast %cst_120 : f32 to vector<8x1xf32>
    %178 = arith.divf %176, %177 : vector<8x1xf32>
    %179 = arith.mulf %174, %174 : vector<8x512xf32>
    %cst_121 = arith.constant dense<0.000000e+00> : vector<8xf32>
    %180 = vector.multi_reduction <add>, %179, %cst_121 [1] : vector<8x512xf32> to vector<8xf32>
    %181 = vector.shape_cast %180 : vector<8xf32> to vector<8x1xf32>
    %cst_122 = arith.constant 5.120000e+02 : f32
    %182 = vector.broadcast %cst_122 : f32 to vector<8x1xf32>
    %183 = arith.divf %181, %182 : vector<8x1xf32>
    %184 = arith.mulf %178, %178 : vector<8x1xf32>
    %185 = arith.subf %183, %184 : vector<8x1xf32>
    %cst_123 = arith.constant 0.000000e+00 : f32
    %186 = vector.broadcast %cst_123 : f32 to vector<8x1xf32>
    %187 = arith.maximumf %185, %186 : vector<8x1xf32>
    %cst_124 = arith.constant 9.99999974E-6 : f32
    %188 = vector.broadcast %cst_124 : f32 to vector<8x1xf32>
    %189 = arith.addf %187, %188 : vector<8x1xf32>
    %190 = math.rsqrt %189 : vector<8x1xf32>
    %191 = arith.mulf %190, %28 : vector<8x1xf32>
    %192 = arith.mulf %178, %191 : vector<8x1xf32>
    %193 = arith.subf %29, %192 : vector<8x1xf32>
    %194 = vector.broadcast %191 : vector<8x1xf32> to vector<8x512xf32>
    %195 = arith.mulf %174, %194 : vector<8x512xf32>
    %196 = vector.broadcast %193 : vector<8x1xf32> to vector<8x512xf32>
    %197 = arith.addf %195, %196 : vector<8x512xf32>
    %cst_125 = arith.constant 0.000000e+00 : f32
    %198 = vector.broadcast %cst_125 : f32 to vector<8x512xf32>
    %199 = arith.maximumf %197, %198 : vector<8x512xf32>
    %200 = vector.extract_strided_slice %199 {offsets = [0, 0], sizes = [8, 256], strides = [1, 1]} : vector<8x512xf32> to vector<8x256xf32>
    %c0_126 = arith.constant 0 : index
    %c17_127 = arith.constant 17 : index
    %201 = vector.load %arg12[%c0_126, %c17_127] : memref<8x580xf32, #tpu.memory_space<vmem>>, vector<8x256xf32>
    tpu.vector_store %arg12[%c0_126, %c17_127], %200 {strides = array<i32>} : memref<8x580xf32, #tpu.memory_space<vmem>>, vector<8x256xf32>,
    %202 = vector.extract_strided_slice %199 {offsets = [0, 256], sizes = [8, 256], strides = [1, 1]} : vector<8x512xf32> to vector<8x256xf32>
    %c0_128 = arith.constant 0 : index
    %c307_129 = arith.constant 307 : index
    %203 = vector.load %arg12[%c0_128, %c307_129] : memref<8x580xf32, #tpu.memory_space<vmem>>, vector<8x256xf32>
    tpu.vector_store %arg12[%c0_128, %c307_129], %202 {strides = array<i32>} : memref<8x580xf32, #tpu.memory_space<vmem>>, vector<8x256xf32>,
    %c0_130 = arith.constant 0 : index
    %c0_131 = arith.constant 0 : index
    %204 = vector.load %arg6[%c0_130, %c0_131] : memref<8x72xbf16, #tpu.memory_space<vmem>>, vector<8x72xbf16>
    %c0_132 = arith.constant 0 : index
    %c0_133 = arith.constant 0 : index
    %205 = vector.load %arg7[%c0_132, %c0_133] : memref<8x1xf32, #tpu.memory_space<vmem>>, vector<8x1xf32>
    %c0_134 = arith.constant 0 : index
    %c0_135 = arith.constant 0 : index
    %206 = vector.load %arg8[%c0_134, %c0_135] : memref<8x1xf32, #tpu.memory_space<vmem>>, vector<8x1xf32>
    %207 = tpu.iota {dimensions = array<i32: 1>} : vector<1x256xi32>
    %c16_i32_136 = arith.constant 16 : i32
    %c0_i32_137 = arith.constant 0 : i32
    %208 = arith.cmpi eq, %c16_i32_136, %c0_i32_137 : i32
    %c1_i32_138 = arith.constant 1 : i32
    %209 = arith.select %208, %c1_i32_138, %c16_i32_136 : i32
    %210 = vector.broadcast %209 : i32 to vector<1x256xi32>
    %211 = arith.remsi %207, %210 : vector<1x256xi32>
    %c0_i32_139 = arith.constant 0 : i32
    %212 = vector.broadcast %c0_i32_139 : i32 to vector<1x256xi32>
    %213 = arith.cmpi ne, %211, %212 : vector<1x256xi32>
    %c0_i32_140 = arith.constant 0 : i32
    %214 = vector.broadcast %c0_i32_140 : i32 to vector<1x256xi32>
    %215 = arith.cmpi slt, %211, %214 : vector<1x256xi32>
    %c0_i32_141 = arith.constant 0 : i32
    %216 = arith.cmpi slt, %209, %c0_i32_141 : i32
    %217 = vector.broadcast %216 : i1 to vector<1x256xi1>
    %218 = vector.broadcast %217 : vector<1x256xi1> to vector<1x256xi1>
    %219 = arith.xori %215, %218 : vector<1x256xi1>
    %220 = arith.andi %219, %213 : vector<1x256xi1>
    %221 = vector.broadcast %209 : i32 to vector<1x256xi32>
    %222 = arith.addi %211, %221 : vector<1x256xi32>
    %223 = arith.select %220, %222, %211 : vector<1x256xi1>, vector<1x256xi32>
    %c0_142 = arith.constant 0 : index
    %c0_143 = arith.constant 0 : index
    %224 = vector.load %arg12[%c0_142, %c0_143] : memref<8x580xf32, #tpu.memory_space<vmem>>, vector<8x256xf32>
    %c1_i32_144 = arith.constant 1 : i32
    %225 = vector.broadcast %c1_i32_144 : i32 to vector<1x256xi32>
    %226 = arith.cmpi sge, %223, %225 : vector<1x256xi32>
    %cst_145 = arith.constant 0.000000e+00 : f32
    %227 = vector.shape_cast %226 : vector<1x256xi1> to vector<1x256xi1>
    %228 = vector.broadcast %227 : vector<1x256xi1> to vector<8x256xi1>
    %229 = vector.broadcast %cst_145 : f32 to vector<8x256xf32>
    %230 = arith.select %228, %224, %229 : vector<8x256xi1>, vector<8x256xf32>
    %231 = arith.truncf %230 : vector<8x256xf32> to vector<8x256xbf16>
    %c0_146 = arith.constant 0 : index
    %c0_147 = arith.constant 0 : index
    %232 = vector.load %arg13[%c0_146, %c0_147] : memref<72x512xbf16, #tpu.memory_space<vmem>>, vector<8x256xbf16>
    tpu.vector_store %arg13[%c0_146, %c0_147], %231 {strides = array<i32>} : memref<72x512xbf16, #tpu.memory_space<vmem>>, vector<8x256xbf16>,
    %c0_148 = arith.constant 0 : index
    %c290_149 = arith.constant 290 : index
    %233 = vector.load %arg12[%c0_148, %c290_149] : memref<8x580xf32, #tpu.memory_space<vmem>>, vector<8x256xf32>
    %c1_i32_150 = arith.constant 1 : i32
    %234 = vector.broadcast %c1_i32_150 : i32 to vector<1x256xi32>
    %235 = arith.cmpi sge, %223, %234 : vector<1x256xi32>
    %cst_151 = arith.constant 0.000000e+00 : f32
    %236 = vector.shape_cast %235 : vector<1x256xi1> to vector<1x256xi1>
    %237 = vector.broadcast %236 : vector<1x256xi1> to vector<8x256xi1>
    %238 = vector.broadcast %cst_151 : f32 to vector<8x256xf32>
    %239 = arith.select %237, %233, %238 : vector<8x256xi1>, vector<8x256xf32>
    %240 = arith.truncf %239 : vector<8x256xf32> to vector<8x256xbf16>
    %c0_152 = arith.constant 0 : index
    %c256_153 = arith.constant 256 : index
    %241 = vector.load %arg13[%c0_152, %c256_153] : memref<72x512xbf16, #tpu.memory_space<vmem>>, vector<8x256xbf16>
    tpu.vector_store %arg13[%c0_152, %c256_153], %240 {strides = array<i32>} : memref<72x512xbf16, #tpu.memory_space<vmem>>, vector<8x256xbf16>,
    %c0_154 = arith.constant 0 : index
    %c1_155 = arith.constant 1 : index
    %242 = vector.load %arg12[%c0_154, %c1_155] : memref<8x580xf32, #tpu.memory_space<vmem>>, vector<8x256xf32>
    %243 = arith.truncf %242 : vector<8x256xf32> to vector<8x256xbf16>
    %c8_156 = arith.constant 8 : index
    %c0_157 = arith.constant 0 : index
    %244 = vector.load %arg13[%c8_156, %c0_157] : memref<72x512xbf16, #tpu.memory_space<vmem>>, vector<8x256xbf16>
    tpu.vector_store %arg13[%c8_156, %c0_157], %243 {strides = array<i32>} : memref<72x512xbf16, #tpu.memory_space<vmem>>, vector<8x256xbf16>,
    %c0_158 = arith.constant 0 : index
    %c291_159 = arith.constant 291 : index
    %245 = vector.load %arg12[%c0_158, %c291_159] : memref<8x580xf32, #tpu.memory_space<vmem>>, vector<8x256xf32>
    %246 = arith.truncf %245 : vector<8x256xf32> to vector<8x256xbf16>
    %c8_160 = arith.constant 8 : index
    %c256_161 = arith.constant 256 : index
    %247 = vector.load %arg13[%c8_160, %c256_161] : memref<72x512xbf16, #tpu.memory_space<vmem>>, vector<8x256xbf16>
    tpu.vector_store %arg13[%c8_160, %c256_161], %246 {strides = array<i32>} : memref<72x512xbf16, #tpu.memory_space<vmem>>, vector<8x256xbf16>,
    %c0_162 = arith.constant 0 : index
    %c2_163 = arith.constant 2 : index
    %248 = vector.load %arg12[%c0_162, %c2_163] : memref<8x580xf32, #tpu.memory_space<vmem>>, vector<8x256xf32>
    %c14_i32_164 = arith.constant 14 : i32
    %249 = vector.broadcast %c14_i32_164 : i32 to vector<1x256xi32>
    %250 = arith.cmpi sle, %223, %249 : vector<1x256xi32>
    %cst_165 = arith.constant 0.000000e+00 : f32
    %251 = vector.shape_cast %250 : vector<1x256xi1> to vector<1x256xi1>
    %252 = vector.broadcast %251 : vector<1x256xi1> to vector<8x256xi1>
    %253 = vector.broadcast %cst_165 : f32 to vector<8x256xf32>
    %254 = arith.select %252, %248, %253 : vector<8x256xi1>, vector<8x256xf32>
    %255 = arith.truncf %254 : vector<8x256xf32> to vector<8x256xbf16>
    %c16_166 = arith.constant 16 : index
    %c0_167 = arith.constant 0 : index
    %256 = vector.load %arg13[%c16_166, %c0_167] : memref<72x512xbf16, #tpu.memory_space<vmem>>, vector<8x256xbf16>
    tpu.vector_store %arg13[%c16_166, %c0_167], %255 {strides = array<i32>} : memref<72x512xbf16, #tpu.memory_space<vmem>>, vector<8x256xbf16>,
    %c0_168 = arith.constant 0 : index
    %c292_169 = arith.constant 292 : index
    %257 = vector.load %arg12[%c0_168, %c292_169] : memref<8x580xf32, #tpu.memory_space<vmem>>, vector<8x256xf32>
    %c14_i32_170 = arith.constant 14 : i32
    %258 = vector.broadcast %c14_i32_170 : i32 to vector<1x256xi32>
    %259 = arith.cmpi sle, %223, %258 : vector<1x256xi32>
    %cst_171 = arith.constant 0.000000e+00 : f32
    %260 = vector.shape_cast %259 : vector<1x256xi1> to vector<1x256xi1>
    %261 = vector.broadcast %260 : vector<1x256xi1> to vector<8x256xi1>
    %262 = vector.broadcast %cst_171 : f32 to vector<8x256xf32>
    %263 = arith.select %261, %257, %262 : vector<8x256xi1>, vector<8x256xf32>
    %264 = arith.truncf %263 : vector<8x256xf32> to vector<8x256xbf16>
    %c16_172 = arith.constant 16 : index
    %c256_173 = arith.constant 256 : index
    %265 = vector.load %arg13[%c16_172, %c256_173] : memref<72x512xbf16, #tpu.memory_space<vmem>>, vector<8x256xbf16>
    tpu.vector_store %arg13[%c16_172, %c256_173], %264 {strides = array<i32>} : memref<72x512xbf16, #tpu.memory_space<vmem>>, vector<8x256xbf16>,
    %c0_174 = arith.constant 0 : index
    %c16_175 = arith.constant 16 : index
    %266 = vector.load %arg12[%c0_174, %c16_175] : memref<8x580xf32, #tpu.memory_space<vmem>>, vector<8x256xf32>
    %c1_i32_176 = arith.constant 1 : i32
    %267 = vector.broadcast %c1_i32_176 : i32 to vector<1x256xi32>
    %268 = arith.cmpi sge, %223, %267 : vector<1x256xi32>
    %cst_177 = arith.constant 0.000000e+00 : f32
    %269 = vector.shape_cast %268 : vector<1x256xi1> to vector<1x256xi1>
    %270 = vector.broadcast %269 : vector<1x256xi1> to vector<8x256xi1>
    %271 = vector.broadcast %cst_177 : f32 to vector<8x256xf32>
    %272 = arith.select %270, %266, %271 : vector<8x256xi1>, vector<8x256xf32>
    %273 = arith.truncf %272 : vector<8x256xf32> to vector<8x256xbf16>
    %c24_178 = arith.constant 24 : index
    %c0_179 = arith.constant 0 : index
    %274 = vector.load %arg13[%c24_178, %c0_179] : memref<72x512xbf16, #tpu.memory_space<vmem>>, vector<8x256xbf16>
    tpu.vector_store %arg13[%c24_178, %c0_179], %273 {strides = array<i32>} : memref<72x512xbf16, #tpu.memory_space<vmem>>, vector<8x256xbf16>,
    %c0_180 = arith.constant 0 : index
    %c306_181 = arith.constant 306 : index
    %275 = vector.load %arg12[%c0_180, %c306_181] : memref<8x580xf32, #tpu.memory_space<vmem>>, vector<8x256xf32>
    %c1_i32_182 = arith.constant 1 : i32
    %276 = vector.broadcast %c1_i32_182 : i32 to vector<1x256xi32>
    %277 = arith.cmpi sge, %223, %276 : vector<1x256xi32>
    %cst_183 = arith.constant 0.000000e+00 : f32
    %278 = vector.shape_cast %277 : vector<1x256xi1> to vector<1x256xi1>
    %279 = vector.broadcast %278 : vector<1x256xi1> to vector<8x256xi1>
    %280 = vector.broadcast %cst_183 : f32 to vector<8x256xf32>
    %281 = arith.select %279, %275, %280 : vector<8x256xi1>, vector<8x256xf32>
    %282 = arith.truncf %281 : vector<8x256xf32> to vector<8x256xbf16>
    %c24_184 = arith.constant 24 : index
    %c256_185 = arith.constant 256 : index
    %283 = vector.load %arg13[%c24_184, %c256_185] : memref<72x512xbf16, #tpu.memory_space<vmem>>, vector<8x256xbf16>
    tpu.vector_store %arg13[%c24_184, %c256_185], %282 {strides = array<i32>} : memref<72x512xbf16, #tpu.memory_space<vmem>>, vector<8x256xbf16>,
    %c0_186 = arith.constant 0 : index
    %c17_187 = arith.constant 17 : index
    %284 = vector.load %arg12[%c0_186, %c17_187] : memref<8x580xf32, #tpu.memory_space<vmem>>, vector<8x256xf32>
    %285 = arith.truncf %284 : vector<8x256xf32> to vector<8x256xbf16>
    %c32_188 = arith.constant 32 : index
    %c0_189 = arith.constant 0 : index
    %286 = vector.load %arg13[%c32_188, %c0_189] : memref<72x512xbf16, #tpu.memory_space<vmem>>, vector<8x256xbf16>
    tpu.vector_store %arg13[%c32_188, %c0_189], %285 {strides = array<i32>} : memref<72x512xbf16, #tpu.memory_space<vmem>>, vector<8x256xbf16>,
    %c0_190 = arith.constant 0 : index
    %c307_191 = arith.constant 307 : index
    %287 = vector.load %arg12[%c0_190, %c307_191] : memref<8x580xf32, #tpu.memory_space<vmem>>, vector<8x256xf32>
    %288 = arith.truncf %287 : vector<8x256xf32> to vector<8x256xbf16>
    %c32_192 = arith.constant 32 : index
    %c256_193 = arith.constant 256 : index
    %289 = vector.load %arg13[%c32_192, %c256_193] : memref<72x512xbf16, #tpu.memory_space<vmem>>, vector<8x256xbf16>
    tpu.vector_store %arg13[%c32_192, %c256_193], %288 {strides = array<i32>} : memref<72x512xbf16, #tpu.memory_space<vmem>>, vector<8x256xbf16>,
    %c0_194 = arith.constant 0 : index
    %c18_195 = arith.constant 18 : index
    %290 = vector.load %arg12[%c0_194, %c18_195] : memref<8x580xf32, #tpu.memory_space<vmem>>, vector<8x256xf32>
    %c14_i32_196 = arith.constant 14 : i32
    %291 = vector.broadcast %c14_i32_196 : i32 to vector<1x256xi32>
    %292 = arith.cmpi sle, %223, %291 : vector<1x256xi32>
    %cst_197 = arith.constant 0.000000e+00 : f32
    %293 = vector.shape_cast %292 : vector<1x256xi1> to vector<1x256xi1>
    %294 = vector.broadcast %293 : vector<1x256xi1> to vector<8x256xi1>
    %295 = vector.broadcast %cst_197 : f32 to vector<8x256xf32>
    %296 = arith.select %294, %290, %295 : vector<8x256xi1>, vector<8x256xf32>
    %297 = arith.truncf %296 : vector<8x256xf32> to vector<8x256xbf16>
    %c40_198 = arith.constant 40 : index
    %c0_199 = arith.constant 0 : index
    %298 = vector.load %arg13[%c40_198, %c0_199] : memref<72x512xbf16, #tpu.memory_space<vmem>>, vector<8x256xbf16>
    tpu.vector_store %arg13[%c40_198, %c0_199], %297 {strides = array<i32>} : memref<72x512xbf16, #tpu.memory_space<vmem>>, vector<8x256xbf16>,
    %c0_200 = arith.constant 0 : index
    %c308_201 = arith.constant 308 : index
    %299 = vector.load %arg12[%c0_200, %c308_201] : memref<8x580xf32, #tpu.memory_space<vmem>>, vector<8x256xf32>
    %c14_i32_202 = arith.constant 14 : i32
    %300 = vector.broadcast %c14_i32_202 : i32 to vector<1x256xi32>
    %301 = arith.cmpi sle, %223, %300 : vector<1x256xi32>
    %cst_203 = arith.constant 0.000000e+00 : f32
    %302 = vector.shape_cast %301 : vector<1x256xi1> to vector<1x256xi1>
    %303 = vector.broadcast %302 : vector<1x256xi1> to vector<8x256xi1>
    %304 = vector.broadcast %cst_203 : f32 to vector<8x256xf32>
    %305 = arith.select %303, %299, %304 : vector<8x256xi1>, vector<8x256xf32>
    %306 = arith.truncf %305 : vector<8x256xf32> to vector<8x256xbf16>
    %c40_204 = arith.constant 40 : index
    %c256_205 = arith.constant 256 : index
    %307 = vector.load %arg13[%c40_204, %c256_205] : memref<72x512xbf16, #tpu.memory_space<vmem>>, vector<8x256xbf16>
    tpu.vector_store %arg13[%c40_204, %c256_205], %306 {strides = array<i32>} : memref<72x512xbf16, #tpu.memory_space<vmem>>, vector<8x256xbf16>,
    %c0_206 = arith.constant 0 : index
    %c32_207 = arith.constant 32 : index
    %308 = vector.load %arg12[%c0_206, %c32_207] : memref<8x580xf32, #tpu.memory_space<vmem>>, vector<8x256xf32>
    %c1_i32_208 = arith.constant 1 : i32
    %309 = vector.broadcast %c1_i32_208 : i32 to vector<1x256xi32>
    %310 = arith.cmpi sge, %223, %309 : vector<1x256xi32>
    %cst_209 = arith.constant 0.000000e+00 : f32
    %311 = vector.shape_cast %310 : vector<1x256xi1> to vector<1x256xi1>
    %312 = vector.broadcast %311 : vector<1x256xi1> to vector<8x256xi1>
    %313 = vector.broadcast %cst_209 : f32 to vector<8x256xf32>
    %314 = arith.select %312, %308, %313 : vector<8x256xi1>, vector<8x256xf32>
    %315 = arith.truncf %314 : vector<8x256xf32> to vector<8x256xbf16>
    %c48_210 = arith.constant 48 : index
    %c0_211 = arith.constant 0 : index
    %316 = vector.load %arg13[%c48_210, %c0_211] : memref<72x512xbf16, #tpu.memory_space<vmem>>, vector<8x256xbf16>
    tpu.vector_store %arg13[%c48_210, %c0_211], %315 {strides = array<i32>} : memref<72x512xbf16, #tpu.memory_space<vmem>>, vector<8x256xbf16>,
    %c0_212 = arith.constant 0 : index
    %c322_213 = arith.constant 322 : index
    %317 = vector.load %arg12[%c0_212, %c322_213] : memref<8x580xf32, #tpu.memory_space<vmem>>, vector<8x256xf32>
    %c1_i32_214 = arith.constant 1 : i32
    %318 = vector.broadcast %c1_i32_214 : i32 to vector<1x256xi32>
    %319 = arith.cmpi sge, %223, %318 : vector<1x256xi32>
    %cst_215 = arith.constant 0.000000e+00 : f32
    %320 = vector.shape_cast %319 : vector<1x256xi1> to vector<1x256xi1>
    %321 = vector.broadcast %320 : vector<1x256xi1> to vector<8x256xi1>
    %322 = vector.broadcast %cst_215 : f32 to vector<8x256xf32>
    %323 = arith.select %321, %317, %322 : vector<8x256xi1>, vector<8x256xf32>
    %324 = arith.truncf %323 : vector<8x256xf32> to vector<8x256xbf16>
    %c48_216 = arith.constant 48 : index
    %c256_217 = arith.constant 256 : index
    %325 = vector.load %arg13[%c48_216, %c256_217] : memref<72x512xbf16, #tpu.memory_space<vmem>>, vector<8x256xbf16>
    tpu.vector_store %arg13[%c48_216, %c256_217], %324 {strides = array<i32>} : memref<72x512xbf16, #tpu.memory_space<vmem>>, vector<8x256xbf16>,
    %c0_218 = arith.constant 0 : index
    %c33_219 = arith.constant 33 : index
    %326 = vector.load %arg12[%c0_218, %c33_219] : memref<8x580xf32, #tpu.memory_space<vmem>>, vector<8x256xf32>
    %327 = arith.truncf %326 : vector<8x256xf32> to vector<8x256xbf16>
    %c56_220 = arith.constant 56 : index
    %c0_221 = arith.constant 0 : index
    %328 = vector.load %arg13[%c56_220, %c0_221] : memref<72x512xbf16, #tpu.memory_space<vmem>>, vector<8x256xbf16>
    tpu.vector_store %arg13[%c56_220, %c0_221], %327 {strides = array<i32>} : memref<72x512xbf16, #tpu.memory_space<vmem>>, vector<8x256xbf16>,
    %c0_222 = arith.constant 0 : index
    %c323_223 = arith.constant 323 : index
    %329 = vector.load %arg12[%c0_222, %c323_223] : memref<8x580xf32, #tpu.memory_space<vmem>>, vector<8x256xf32>
    %330 = arith.truncf %329 : vector<8x256xf32> to vector<8x256xbf16>
    %c56_224 = arith.constant 56 : index
    %c256_225 = arith.constant 256 : index
    %331 = vector.load %arg13[%c56_224, %c256_225] : memref<72x512xbf16, #tpu.memory_space<vmem>>, vector<8x256xbf16>
    tpu.vector_store %arg13[%c56_224, %c256_225], %330 {strides = array<i32>} : memref<72x512xbf16, #tpu.memory_space<vmem>>, vector<8x256xbf16>,
    %c0_226 = arith.constant 0 : index
    %c34_227 = arith.constant 34 : index
    %332 = vector.load %arg12[%c0_226, %c34_227] : memref<8x580xf32, #tpu.memory_space<vmem>>, vector<8x256xf32>
    %c14_i32_228 = arith.constant 14 : i32
    %333 = vector.broadcast %c14_i32_228 : i32 to vector<1x256xi32>
    %334 = arith.cmpi sle, %223, %333 : vector<1x256xi32>
    %cst_229 = arith.constant 0.000000e+00 : f32
    %335 = vector.shape_cast %334 : vector<1x256xi1> to vector<1x256xi1>
    %336 = vector.broadcast %335 : vector<1x256xi1> to vector<8x256xi1>
    %337 = vector.broadcast %cst_229 : f32 to vector<8x256xf32>
    %338 = arith.select %336, %332, %337 : vector<8x256xi1>, vector<8x256xf32>
    %339 = arith.truncf %338 : vector<8x256xf32> to vector<8x256xbf16>
    %c64_230 = arith.constant 64 : index
    %c0_231 = arith.constant 0 : index
    %340 = vector.load %arg13[%c64_230, %c0_231] : memref<72x512xbf16, #tpu.memory_space<vmem>>, vector<8x256xbf16>
    tpu.vector_store %arg13[%c64_230, %c0_231], %339 {strides = array<i32>} : memref<72x512xbf16, #tpu.memory_space<vmem>>, vector<8x256xbf16>,
    %c0_232 = arith.constant 0 : index
    %c324_233 = arith.constant 324 : index
    %341 = vector.load %arg12[%c0_232, %c324_233] : memref<8x580xf32, #tpu.memory_space<vmem>>, vector<8x256xf32>
    %c14_i32_234 = arith.constant 14 : i32
    %342 = vector.broadcast %c14_i32_234 : i32 to vector<1x256xi32>
    %343 = arith.cmpi sle, %223, %342 : vector<1x256xi32>
    %cst_235 = arith.constant 0.000000e+00 : f32
    %344 = vector.shape_cast %343 : vector<1x256xi1> to vector<1x256xi1>
    %345 = vector.broadcast %344 : vector<1x256xi1> to vector<8x256xi1>
    %346 = vector.broadcast %cst_235 : f32 to vector<8x256xf32>
    %347 = arith.select %345, %341, %346 : vector<8x256xi1>, vector<8x256xf32>
    %348 = arith.truncf %347 : vector<8x256xf32> to vector<8x256xbf16>
    %c64_236 = arith.constant 64 : index
    %c256_237 = arith.constant 256 : index
    %349 = vector.load %arg13[%c64_236, %c256_237] : memref<72x512xbf16, #tpu.memory_space<vmem>>, vector<8x256xbf16>
    tpu.vector_store %arg13[%c64_236, %c256_237], %348 {strides = array<i32>} : memref<72x512xbf16, #tpu.memory_space<vmem>>, vector<8x256xbf16>,
    %c0_238 = arith.constant 0 : index
    %c0_239 = arith.constant 0 : index
    %350 = vector.load %arg13[%c0_238, %c0_239] : memref<72x512xbf16, #tpu.memory_space<vmem>>, vector<72x512xbf16>
    %cst_240 = arith.constant dense<0.000000e+00> : vector<8x512xf32>
    %351 = tpu.matmul %204, %350, %cst_240 {dimension_numbers = #tpu.dot_dimension_numbers<[1], [0], [0], [1], [0, 0, 1, 1], [], []>} : vector<8x72xbf16>, vector<72x512xbf16>, vector<8x512xf32> -> vector<8x512xf32>
    %cst_241 = arith.constant dense<0.000000e+00> : vector<8xf32>
    %352 = vector.multi_reduction <add>, %351, %cst_241 [1] : vector<8x512xf32> to vector<8xf32>
    %353 = vector.shape_cast %352 : vector<8xf32> to vector<8x1xf32>
    %cst_242 = arith.constant 5.120000e+02 : f32
    %354 = vector.broadcast %cst_242 : f32 to vector<8x1xf32>
    %355 = arith.divf %353, %354 : vector<8x1xf32>
    %356 = arith.mulf %351, %351 : vector<8x512xf32>
    %cst_243 = arith.constant dense<0.000000e+00> : vector<8xf32>
    %357 = vector.multi_reduction <add>, %356, %cst_243 [1] : vector<8x512xf32> to vector<8xf32>
    %358 = vector.shape_cast %357 : vector<8xf32> to vector<8x1xf32>
    %cst_244 = arith.constant 5.120000e+02 : f32
    %359 = vector.broadcast %cst_244 : f32 to vector<8x1xf32>
    %360 = arith.divf %358, %359 : vector<8x1xf32>
    %361 = arith.mulf %355, %355 : vector<8x1xf32>
    %362 = arith.subf %360, %361 : vector<8x1xf32>
    %cst_245 = arith.constant 0.000000e+00 : f32
    %363 = vector.broadcast %cst_245 : f32 to vector<8x1xf32>
    %364 = arith.maximumf %362, %363 : vector<8x1xf32>
    %cst_246 = arith.constant 9.99999974E-6 : f32
    %365 = vector.broadcast %cst_246 : f32 to vector<8x1xf32>
    %366 = arith.addf %364, %365 : vector<8x1xf32>
    %367 = math.rsqrt %366 : vector<8x1xf32>
    %368 = arith.mulf %367, %205 : vector<8x1xf32>
    %369 = arith.mulf %355, %368 : vector<8x1xf32>
    %370 = arith.subf %206, %369 : vector<8x1xf32>
    %371 = vector.broadcast %368 : vector<8x1xf32> to vector<8x512xf32>
    %372 = arith.mulf %351, %371 : vector<8x512xf32>
    %373 = vector.broadcast %370 : vector<8x1xf32> to vector<8x512xf32>
    %374 = arith.addf %372, %373 : vector<8x512xf32>
    %cst_247 = arith.constant 0.000000e+00 : f32
    %375 = vector.broadcast %cst_247 : f32 to vector<8x512xf32>
    %376 = arith.maximumf %374, %375 : vector<8x512xf32>
    %377 = vector.extract_strided_slice %376 {offsets = [0, 0], sizes = [8, 256], strides = [1, 1]} : vector<8x512xf32> to vector<8x256xf32>
    %c0_248 = arith.constant 0 : index
    %c0_249 = arith.constant 0 : index
    %378 = vector.load %arg9[%c0_248, %c0_249] : memref<16x256xf32, #tpu.memory_space<vmem>>, vector<8x256xf32>
    tpu.vector_store %arg9[%c0_248, %c0_249], %377 {strides = array<i32>} : memref<16x256xf32, #tpu.memory_space<vmem>>, vector<8x256xf32>,
    %379 = vector.extract_strided_slice %376 {offsets = [0, 256], sizes = [8, 256], strides = [1, 1]} : vector<8x512xf32> to vector<8x256xf32>
    %c8_250 = arith.constant 8 : index
    %c0_251 = arith.constant 0 : index
    %380 = vector.load %arg9[%c8_250, %c0_251] : memref<16x256xf32, #tpu.memory_space<vmem>>, vector<8x256xf32>
    tpu.vector_store %arg9[%c8_250, %c0_251], %379 {strides = array<i32>} : memref<16x256xf32, #tpu.memory_space<vmem>>, vector<8x256xf32>,
    return
  }
}

</mosaic_0001>

<bundles_post_ra>
// kernel: tpu_custom_call.1
= control target key start
LH: loop header
LB: loop body
LE: loop exit
PB: predicated region body
PF: predicated region fallthrough
CT: control target
= control target key end

     0   :  { %14 = vsyncpa [#allocation7], 0  ;;  %s2294_s0 = inlined_call_operand.vmem [shape: f32[8,256], index: 0, kind: input, shape index: {}]   ;;  %s2295_s1 = inlined_call_operand.vmem [shape: f32[8,64], index: 1, kind: input, shape index: {}]   ;;  %s2296_s2 = inlined_call_operand.hbm [shape: f32[64,256], index: 2, kind: input, shape index: {}]   ;;  %s2297_s3 = inlined_call_operand.vmem [shape: bf16[8,72], index: 3, kind: input, shape index: {}]   ;;  %s2298_s4 = inlined_call_operand.vmem [shape: f32[8,1], index: 4, kind: input, shape index: {}]   ;;  %s2299_s5 = inlined_call_operand.vmem [shape: f32[8,1], index: 5, kind: input, shape index: {}]   ;;  %s2300_s6 = inlined_call_operand.vmem [shape: bf16[8,72], index: 6, kind: input, shape index: {}]   ;;  %s2301_s7 = inlined_call_operand.vmem [shape: f32[8,1], index: 7, kind: input, shape index: {}]   ;;  %s2302_s8 = inlined_call_operand.vmem [shape: f32[8,1], index: 8, kind: input, shape index: {}]   ;;  %s2303_s9 = inlined_call_operand.hbm [shape: f32[16,256], index: 9, kind: output, shape index: {}]  }
   0x1   :  { %15 = vsyncpa [#allocation8], 0  ;;  %s24_s11 = sshll.u32 %s2296_s2, 4  ;;  %s1794_s12 = smov [#allocation6]   ;;  %s25_s11 = int_to_ptr.hbm [resolvable:$true] %s24_s11 }
   0x2   :  { %s26_s13 = sshll.u32 %s1794_s12, 4  ;;  %s1795_s14 = smov 256   ;;  %s27_s13 = int_to_ptr.vmem [resolvable:$true] %s26_s13 }
   0x3   :  { %s1796_s15 = smov 16  }
   0x4   :  { %32 = dma.hbm_to_vmem [thread:$0]  %s25_s11, 2048, %s27_s13, [#allocation7], %s1795_s14, %s1795_s14, %s1796_s15  }
   0x5   :  { %1790 = dma.done.wait [#allocation7], 2048  }
   0x6   :  { %1791 = vsyncadd [#allocation7], 4294965248  ;;  %v115_v0 = vld [vmem:[#allocation6 + $0x78] sm:$0xff]  ;;  %v113_v1 = vld [vmem:[#allocation6 + $0x68] sm:$0xff]  ;;  %s1797_s17 = smov 17   ;;  %s1798_s20 = smov 51   ;;  %v193_v39 = vlaneseq }
   0x7   :  { %148 = vmatpush.msra.mxu1 %v115_v0  ;;  %v114_v2 = vld [vmem:[#allocation6 + $0x70] sm:$0xff]  ;;  %v112_v3 = vld [vmem:[#allocation6 + $0x60] sm:$0xff]  ;;  %v111_v4 = vld [vmem:[#allocation6 + $0x58] sm:$0xff]  ;;  %vm116_vm0 = vcmask 523264   ;;  %vm50_vm1 = vcmask 138240   ;;  %vm74_vm2 = vcmask 1043592  }
   0x8   :  { %128 = vmatpush.msra.mxu0 %v114_v2  ;;  %v110_v5 = vld [vmem:[#allocation6 + $0x50] sm:$0xff]  ;;  %v109_v6 = vld [vmem:[#allocation6 + $0x48] sm:$0xff]  ;;  %v108_v7 = vld [vmem:[#allocation6 + $0x40] sm:$0xff]  ;;  %v1799_v24 = vmov 0.0   ;;  %vm52_vm3 = vcmask 277640   ;;  %vm56_vm4 = vcmask 417040  }
   0x9   :  { %149 = vmatpush.msra.mxu1 %v113_v1  ;;  %v62_v8 = vld [vmem:[%s2294_s0] sm:$0xf]  ;;  %v107_v9 = vld [vmem:[#allocation6 + $0x38] sm:$0xff]  ;;  %v79_v10 = vld [vmem:[%s2294_s0] sm:$0xf0]  ;;  %51 = vst.msk [vmem:[#allocation2] sm:$0xff] %vm50_vm1, %v1799_v24 }
   0xa   :  { %129 = vmatpush.msra.mxu0 %v112_v3  ;;  %66 = vrot.lane.b32.xlu0 %v62_v8, %s1797_s17  ;;  %v106_v11 = vld [vmem:[#allocation6 + $0x30] sm:$0xff]  ;;  %v83_v12 = vrot.slane %v79_v10, 4  ;;  %v105_v13 = vld [vmem:[#allocation6 + $0x28] sm:$0xff]  ;;  %v104_v14 = vld [vmem:[#allocation6 + $0x20] sm:$0xff]  ;;  %54 = vst.msk [vmem:[#allocation4] sm:$0xff] %vm50_vm1, %v1799_v24  ;;  %vm77_vm5 = vcmask 134144  }
   0xb   :  { %150 = vmatpush.msra.mxu1 %v111_v4  ;;  %v103_v15 = vld [vmem:[#allocation6 + $0x18] sm:$0xff]  ;;  %v102_v16 = vld [vmem:[#allocation6 + $0x10] sm:$0xff]  ;;  %v101_v18 = vld [vmem:[#allocation6 + $0x8] sm:$0xff]  ;;  %53 = vst.msk [vmem:[#allocation2 + $0x10] sm:$0xff] %vm52_vm3, %v1799_v24  ;;  %vm94_vm6 = vcmask 1043864   ;;  %vm58_vm7 = vcmask 556440  }
   0xc   :  { %130 = vmatpush.msra.mxu0 %v110_v5  ;;  %85 = vrot.lane.b32.xlu2 %v83_v12, %s1798_s20  ;;  %v63_v17 = vld [vmem:[%s2294_s0 + $0x8] sm:$0xf]  ;;  %v99_v19 = vld [vmem:[%s2295_s1] sm:$0xff]  ;;  %v100_v20 = vld [vmem:[#allocation6] sm:$0xff]  ;;  %57 = vst.msk [vmem:[#allocation2 + $0x10] sm:$0xff] %vm56_vm4, %v1799_v24  ;;  %vm89_vm8 = vcmask 416768  }
   0xd   :  { %151 = vmatpush.msra.mxu1 %v109_v6  ;;  %v80_v21 = vld [vmem:[%s2294_s0 + $0x8] sm:$0xf0]  ;;  %55 = vst.msk [vmem:[#allocation4 + $0x10] sm:$0xff] %vm52_vm3, %v1799_v24  ;;  %vm97_vm9 = vcmask 412672   ;;  %vm188_vm10 = vcmask 416772   ;;  %vm172_vm11 = vcmask 1047692  }
   0xe   :  { %131 = vmatpush.msra.mxu0 %v108_v7  ;;  %v84_v22 = vrot.slane %v80_v21, 4  ;;  %59 = vst.msk [vmem:[#allocation2 + $0x20] sm:$0xff] %vm58_vm7, %v1799_v24  ;;  %s1800_s0 = smov 60   ;;  %s1801_s1 = smov 62   ;;  %v1911_v40 = vand.u32 127, %v193_v39  ;;  %vm175_vm12 = vcmask 138244  }
   0xf   :  { %152 = vmatpush.msra.mxu1 %v107_v9  ;;  %60 = vst.msk [vmem:[#allocation4 + $0x10] sm:$0xff] %vm56_vm4, %v1799_v24  ;;  %s1802_s27 = smov 92   ;;  %vm185_vm13 = vcmask 1047964   ;;  %s1803_s28 = smov 76   ;;  %vm470_vm4 = vcmask 785408  }
  0x10   :  { %132 = vmatpush.msra.mxu0 %v106_v11  ;;  %61 = vst.msk [vmem:[#allocation4 + $0x20] sm:$0xff] %vm58_vm7, %v1799_v24  ;;  %v1914_v41 = vadd.s32 128, %v1911_v40  ;;  %s1804_s29 = smov 77   ;;  %v200_v45 = vand.u32 15, %v1911_v40  ;;  %s1805_s30 = smov 61   ;;  %vm428_vm7 = vcmask 900096  }
  0x11   :  { %153 = vmatpush.msra.mxu1 %v105_v13  ;;  %s1806_s10 = smov 94   ;;  %s1807_s11 = smov 96  }
  0x12   :  { %133 = vmatpush.msra.mxu0 %v104_v14  ;;  %68 = vrot.lane.b32.xlu0 %v63_v17, %s1797_s17  ;;  %v207_v46 = vand.u32 15, %v1914_v41  ;;  %vm1929_vm14 = vcmp.ge.s32.totalorder %v200_v45, 1  ;;  %s1808_s12 = smov 110   ;;  %s1809_s13 = smov 112   ;;  %vm1992_vm3 = vcmp.le.s32.totalorder %v200_v45, 14 }
  0x13   :  { %154 = vmatpush.msra.mxu1 %v103_v15  ;;  %s1810_s2 = smov 126   ;;  %s1811_s16 = smov 78  }
  0x14   :  { %134 = vmatpush.msra.mxu0 %v102_v16  ;;  %vm1935_vm15 = vcmp.ge.s32.totalorder %v207_v46, 1  ;;  %s1812_s18 = smov 95   ;;  %s1813_s19 = smov 111  }
  0x15   :  { %155 = vmatpush.msra.mxu1 %v101_v18  ;;  %s1814_s21 = smov 127   ;;  %s1815_s22 = smov 93  }
  0x16   :  { %1429 = vmatmul.msk.f32.vlgmr.msra.gmra.mxu1 %vm116_vm0, %v99_v19  ;;  %135 = vmatpush.msra.mxu0 %v100_v20 }
  0x17   :  { %1428 = vmatmul.msk.f32.vlgmr.msra.gmra.mxu0 %vm116_vm0, %v99_v19  ;;  %vm568_vm0 = vcmask 490496  }
  0x1a   :  { %87 = vrot.lane.b32.xlu0 %v84_v22, %s1798_s20 }
  0x66   :  { %v86_v31 = vpop.permute.xlu2 %85 }
  0x7c   :  { %v67_v23 = vpop.permute.xlu0 %66 }
  0x7d   :  { %75 = vst.msk [vmem:[#allocation2] sm:$0xf] %vm74_vm2, %v67_v23  ;;  %vm1986_vm2 = vcmp.le.s32.totalorder %v207_v46, 14 }
  0x84   :  { %v69_v29 = vpop.permute.xlu0 %68 }
  0x85   :  { %v70_v30 = vsel %vm50_vm1, %v67_v23, %v69_v29  ;;  %78 = vst.msk [vmem:[#allocation2 + $0x10] sm:$0xf] %vm77_vm5, %v69_v29  ;;  %vm244_vm5 = vcmask 769024  }
  0x86   :  { %76 = vst [vmem:[#allocation2 + $0x8] sm:$0xf] %v70_v30 }
  0x87   :  { %95 = vst.msk [vmem:[#allocation2 + $0x10] sm:$0xf] %vm94_vm6, %v86_v31  ;;  %vm266_vm6 = vcmask 1043456  }
  0x8c   :  { %v88_v32 = vpop.permute.xlu0 %87 }
  0x8d   :  { %v90_v33 = vsel %vm89_vm8, %v86_v31, %v88_v32  ;;  %98 = vst.msk [vmem:[#allocation2 + $0x20] sm:$0xf] %vm97_vm9, %v88_v32  ;;  %vm2307_vm9 = vcmask 1031168  }
  0x8e   :  { %96 = vst [vmem:[#allocation2 + $0x18] sm:$0xf] %v90_v33 }
  0x93   :  { %v157_v25 = vpop.f32.mrf.mxu1 }
  0x94   :  { %179 = vrot.lane.b32.xlu1 %v157_v25, %s1798_s20  ;;  %v137_v26 = vpop.f32.mrf.mxu0  ;;  %v163_v28 = vrot.slane %v157_v25, 4 }
  0x95   :  { %177 = vrot.lane.b32.xlu2 %v137_v26, %s1798_s20  ;;  %v162_v27 = vrot.slane %v137_v26, 4 }
  0x9c   :  { %164 = vrot.lane.b32.xlu1 %v162_v27, %s1797_s17 }
  0xa4   :  { %166 = vrot.lane.b32.xlu1 %v163_v28, %s1797_s17 }
  0xef   :  { %v178_v34 = vpop.permute.xlu2 %177 }
 0x106   :  { %v180_v35 = vpop.permute.xlu1 %179 }
 0x107   :  { %v181_v36 = vsel %vm89_vm8, %v178_v34, %v180_v35  ;;  %189 = vst.msk [vmem:[#allocation2 + $0x20] sm:$0xf0] %vm188_vm10, %v180_v35  ;;  %vm2305_vm10 = vcmask 916480  }
 0x108   :  { %187 = vst [vmem:[#allocation2 + $0x18] sm:$0xf0] %v181_v36 }
 0x10e   :  { %v165_v37 = vpop.permute.xlu1 %164  ;;  %v1903_v38 = vld [vmem:[#allocation2 + $0x20] sm:$0xff] }
 0x10f   :  { %173 = vst.msk [vmem:[#allocation2] sm:$0xf0] %vm172_vm11, %v165_v37  ;;  %566 = vrot.lane.b32.xlu0 %v1903_v38, %s1800_s0  ;;  %489 = vrot.lane.b32.xlu1 %v1903_v38, %s1801_s1  ;;  %v1918_v42 = vpack.c.bf16 %v1903_v38, %v1903_v38  ;;  %v557_v56 = vld [vmem:[#allocation2 + $0x18] sm:$0xff]  ;;  %vm2304_vm11 = vcmask 621568  }
 0x110   :  { %327 = vrot.lane.b32.xlu2 %v1903_v38, %s1802_s27 }
 0x116   :  { %v167_v43 = vpop.permute.xlu1 %166  ;;  %v220_v48 = vld [vmem:[#allocation2] sm:$0xff] }
 0x117   :  { %v168_v44 = vsel %vm50_vm1, %v165_v37, %v167_v43  ;;  %176 = vst.msk [vmem:[#allocation2 + $0x10] sm:$0xf0] %vm175_vm12, %v167_v43  ;;  %447 = vrot.lane.b32.xlu0 %v1903_v38, %s1803_s28  ;;  %407 = vrot.lane.b32.xlu1 %v1918_v42, %s1804_s29  ;;  %v228_v51 = vsel %vm1929_vm14, %v220_v48, 0.0  ;;  %vm329_vm12 = vcmask 752640  }
 0x118   :  { %174 = vst [vmem:[#allocation2 + $0x8] sm:$0xf0] %v168_v44 }
 0x119   :  { %186 = vst.msk [vmem:[#allocation2 + $0x10] sm:$0xf0] %vm185_vm13, %v178_v34  ;;  %vm2306_vm13 = vcmask 506880  }
 0x11f   :  { %v221_v50 = vld [vmem:[#allocation2 + $0x8] sm:$0xff]  ;;  %527 = vrot.lane.b32.xlu0 %v1918_v42, %s1805_s30 }
 0x120   :  { %v229_v52 = vsel %vm1935_vm15, %v221_v50, 0.0  ;;  %v1623_v53 = vpack.i.bf16 %v221_v50, %v220_v48  ;;  %v538_v55 = vld [vmem:[#allocation2 + $0x10] sm:$0xff]  ;;  %v503_v58 = vpack.c.bf16 %v221_v50, %v220_v48 }
 0x121   :  { %v230_v54 = vpack.c.bf16 %v229_v52, %v228_v51  ;;  %v1633_v57 = vpack.i.bf16 %v557_v56, %v538_v55  ;;  %v504_v59 = vpack.c.bf16 %v538_v55, %v538_v55  ;;  %v401_v60 = vpack.c.bf16 %v557_v56, %v538_v55 }
 0x122   :  { %1624 = vrot.lane.b32.xlu2 %v1623_v53, %s1806_s10  ;;  %1629 = vrot.lane.b32.xlu1 %v1623_v53, %s1807_s11 }
 0x123   :  { %231 = vst [vmem:[#allocation3] sm:$0xff] %v230_v54 }
 0x127   :  { %546 = vrot.lane.b32.xlu0 %v538_v55, %s1806_s10 }
 0x12a   :  { %468 = vrot.lane.b32.xlu2 %v538_v55, %s1807_s11  ;;  %426 = vrot.lane.b32.xlu1 %v538_v55, %s1808_s12 }
 0x12f   :  { %1639 = vrot.lane.b32.xlu0 %v1623_v53, %s1808_s12 }
 0x132   :  { %1634 = vrot.lane.b32.xlu2 %v1633_v57, %s1800_s0  ;;  %1649 = vrot.lane.b32.xlu1 %v1623_v53, %s1809_s13 }
 0x137   :  { %306 = vrot.lane.b32.xlu0 %v538_v55, %s1810_s2 }
 0x13a   :  { %1664 = vrot.lane.b32.xlu1 %v1633_v57, %s1802_s27  ;;  %1644 = vrot.lane.b32.xlu2 %v1623_v53, %s1810_s2 }
 0x13f   :  { %1654 = vrot.lane.b32.xlu0 %v1633_v57, %s1801_s1 }
 0x142   :  { %369 = vrot.lane.b32.xlu1 %v1903_v38, %s1811_s16  ;;  %348 = vrot.lane.b32.xlu2 %v538_v55, %s1809_s13 }
 0x147   :  { %507 = vrot.lane.b32.xlu0 %v503_v58, %s1812_s18 }
 0x14a   :  { %509 = vrot.lane.b32.xlu1 %v504_v59, %s1812_s18  ;;  %1659 = vrot.lane.b32.xlu2 %v1633_v57, %s1803_s28 }
 0x14f   :  { %1669 = vrot.lane.b32.xlu0 %v1633_v57, %s1811_s16 }
 0x152   :  { %387 = vrot.lane.b32.xlu1 %v503_v58, %s1813_s19  ;;  %1674 = vrot.lane.b32.xlu2 %v1633_v57, %s1806_s10 }
 0x157   :  { %405 = vrot.lane.b32.xlu0 %v401_v60, %s1804_s29 }
 0x15a   :  { %389 = vrot.lane.b32.xlu2 %v504_v59, %s1813_s19  ;;  %260 = vrot.lane.b32.xlu1 %v503_v58, %s1814_s21 }
 0x15f   :  { %242 = vrot.lane.b32.xlu0 %v1903_v38, %s1806_s10 }
 0x162   :  { %525 = vrot.lane.b32.xlu2 %v401_v60, %s1805_s30  ;;  %279 = vrot.lane.b32.xlu1 %v401_v60, %s1815_s22 }
 0x16a   :  { %262 = vrot.lane.b32.xlu2 %v504_v59, %s1814_s21  ;;  %v1976_v61 = vpop.permute.xlu2 %327 }
 0x172   :  { %281 = vrot.lane.b32.xlu2 %v1918_v42, %s1815_s22 }
 0x17c   :  { %v1625_v62 = vpop.permute.xlu2 %1624 }
 0x17d   :  { %v1627_v15 = vunpack.i.h.bf16 %v1625_v62  ;;  %v1626_v16 = vunpack.i.l.bf16 %v1625_v62 }
 0x17f   :  { %v548_v27 = vsel %vm244_vm5, %v1626_v16, %v1627_v15 }
 0x180   :  { %v552_v35 = vsel %vm1992_vm3, %v548_v27, 0.0 }
 0x181   :  { %v567_v63 = vpop.permute.xlu0 %566  ;;  %v1978_v0 = vpop.permute.xlu1 %489 }
 0x184   :  { %v469_v1 = vpop.permute.xlu2 %468 }
 0x189   :  { %v1980_v2 = vpop.permute.xlu0 %447  ;;  %v1982_v3 = vpop.permute.xlu1 %407 }
 0x18c   :  { %v1635_v4 = vpop.permute.xlu2 %1634 }
 0x18d   :  { %v1637_v6 = vunpack.i.h.bf16 %v1635_v4  ;;  %v1636_v7 = vunpack.i.l.bf16 %v1635_v4 }
 0x18f   :  { %v570_v9 = vsel %vm568_vm0, %v1637_v6, %v567_v63  ;;  %v569_v10 = vsel %vm568_vm0, %v1636_v7, %v1637_v6 }
 0x190   :  { %v574_v11 = vsel %vm1986_vm2, %v570_v9, 0.0  ;;  %v573_v12 = vsel %vm1992_vm3, %v569_v10, 0.0 }
 0x191   :  { %v575_v13 = vpack.c.bf16 %v574_v11, %v573_v12  ;;  %v2002_v14 = vpop.permute.xlu0 %527 }
 0x193   :  { %v647_v17 = vunpack.c.l.b16 %v575_v13  ;;  %v648_v18 = vunpack.c.h.b16 %v575_v13 }
 0x194   :  { %v1630_v19 = vpop.permute.xlu1 %1629  ;;  %v2004_v20 = vpop.permute.xlu2 %1644 }
 0x195   :  { %v1632_v21 = vunpack.i.h.bf16 %v1630_v19  ;;  %v1631_v22 = vunpack.i.l.bf16 %v1630_v19  ;;  %v667_v23 = vpack.c.b16 %v647_v17, %v647_v17  ;;  %v668_v24 = vpack.c.b16 %v648_v18, %v648_v18 }
 0x196   :  { %v1647_v51 = vunpack.i.h.bf16 %v2004_v20  ;;  %v1646_v52 = vunpack.i.l.bf16 %v2004_v20 }
 0x197   :  { %v472_v25 = vsel %vm470_vm4, %v1632_v21, %v469_v1  ;;  %v471_v26 = vsel %vm470_vm4, %v1631_v22, %v1632_v21  ;;  %v697_v30 = vsel %vm266_vm6, %v667_v23, 0  ;;  %v700_v31 = vsel %vm266_vm6, %v668_v24, 0 }
 0x198   :  { %v476_v28 = vsel %vm1935_vm15, %v472_v25, 0.0  ;;  %v475_v29 = vsel %vm1929_vm14, %v471_v26, 0.0  ;;  %731 = vmatpush.bf16.msrb.mxu0 %v697_v30  ;;  %744 = vmatpush.bf16.msrb.mxu1 %v700_v31  ;;  %v309_v7 = vsel %vm2307_vm9, %v1646_v52, %v1647_v51 }
 0x199   :  { %v477_v32 = vpack.c.bf16 %v476_v28, %v475_v29  ;;  %v547_v33 = vpop.permute.xlu0 %546  ;;  %v313_v20 = vsel %vm1992_vm3, %v309_v7, 0.0 }
 0x19a   :  { %v549_v34 = vsel %vm244_vm5, %v1627_v15, %v547_v33 }
 0x19b   :  { %478 = vst [vmem:[#allocation3 + $0x60] sm:$0xff] %v477_v32  ;;  %v553_v36 = vsel %vm1986_vm2, %v549_v34, 0.0 }
 0x19c   :  { %v554_v37 = vpack.c.bf16 %v553_v36, %v552_v35  ;;  %v427_v38 = vpop.permute.xlu1 %426  ;;  %v349_v39 = vpop.permute.xlu2 %348 }
 0x19e   :  { %v645_v40 = vunpack.c.l.b16 %v554_v37  ;;  %v646_v41 = vunpack.c.h.b16 %v554_v37 }
 0x1a0   :  { %v665_v42 = vpack.c.b16 %v645_v40, %v645_v40  ;;  %v666_v43 = vpack.c.b16 %v646_v41, %v646_v41  ;;  %v530_v41 = vrot.slane %v2002_v14, 4 }
 0x1a1   :  { %v1640_v44 = vpop.permute.xlu0 %1639 }
 0x1a2   :  { %v1642_v45 = vunpack.i.h.bf16 %v1640_v44  ;;  %v1641_v46 = vunpack.i.l.bf16 %v1640_v44  ;;  %v691_v48 = vsel %vm266_vm6, %v665_v42, 0  ;;  %v694_v50 = vsel %vm266_vm6, %v666_v43, 0 }
 0x1a3   :  { %705 = vmatpush.bf16.msra.mxu2 %v691_v48  ;;  %718 = vmatpush.bf16.msra.mxu3 %v694_v50 }
 0x1a4   :  { %v430_v53 = vsel %vm428_vm7, %v1642_v45, %v427_v38  ;;  %v429_v54 = vsel %vm428_vm7, %v1641_v46, %v1642_v45  ;;  %v1650_v55 = vpop.permute.xlu1 %1649  ;;  %v1660_v56 = vpop.permute.xlu2 %1659 }
 0x1a5   :  { %v434_v57 = vsel %vm1986_vm2, %v430_v53, 0.0  ;;  %v433_v58 = vsel %vm1992_vm3, %v429_v54, 0.0  ;;  %v1652_v59 = vunpack.i.h.bf16 %v1650_v55  ;;  %v1651_v60 = vunpack.i.l.bf16 %v1650_v55 }
 0x1a6   :  { %v435_v62 = vpack.c.bf16 %v434_v57, %v433_v58  ;;  %v1662_v63 = vunpack.i.h.bf16 %v1660_v56  ;;  %v1661_v1 = vunpack.i.l.bf16 %v1660_v56 }
 0x1a7   :  { %v351_v4 = vsel %vm2305_vm10, %v1651_v60, %v1652_v59  ;;  %v352_v6 = vsel %vm2305_vm10, %v1652_v59, %v349_v39  ;;  %vm2308_vm10 = vcmask 498688  }
 0x1a8   :  { %436 = vst [vmem:[#allocation3 + $0x50] sm:$0xff] %v435_v62  ;;  %v355_v9 = vsel %vm1929_vm14, %v351_v4, 0.0  ;;  %v356_v10 = vsel %vm1935_vm15, %v352_v6, 0.0  ;;  %v451_v11 = vsel %vm2304_vm11, %v1662_v63, %v1980_v2  ;;  %v450_v12 = vsel %vm2304_vm11, %v1661_v1, %v1662_v63  ;;  %v1480_v63 = vld [vmem:[#allocation3 + $0x60] sm:$0xf] }
 0x1a9   :  { %v357_v13 = vpack.c.bf16 %v356_v10, %v355_v9  ;;  %v455_v15 = vsel %vm1986_vm2, %v451_v11, 0.0  ;;  %v454_v16 = vsel %vm1992_vm3, %v450_v12, 0.0  ;;  %v307_v17 = vpop.permute.xlu0 %306  ;;  %vm514_vm11 = vcmask 777216   ;;  %v1578_v4 = vld [vmem:[#allocation3 + $0x64] sm:$0xf] }
 0x1aa   :  { %v456_v18 = vpack.c.bf16 %v455_v15, %v454_v16  ;;  %v310_v19 = vsel %vm2307_vm9, %v1647_v51, %v307_v17  ;;  %vm2314_vm9 = vcmask 908288  }
 0x1ab   :  { %358 = vst [vmem:[#allocation3 + $0x30] sm:$0xff] %v357_v13  ;;  %v314_v2 = vsel %vm1986_vm2, %v310_v19, 0.0  ;;  %v410_v13 = vrot.slane %v1982_v3, 4 }
 0x1ac   :  { %457 = vst [vmem:[#allocation3 + $0x58] sm:$0xff] %v456_v18  ;;  %v315_v21 = vpack.c.bf16 %v314_v2, %v313_v20  ;;  %v1665_v22 = vpop.permute.xlu1 %1664  ;;  %v2049_v23 = vpop.permute.xlu2 %1674 }
 0x1ad   :  { %v1667_v24 = vunpack.i.h.bf16 %v1665_v22  ;;  %v1666_v25 = vunpack.i.l.bf16 %v1665_v22  ;;  %v1677_v22 = vunpack.i.h.bf16 %v2049_v23 }
 0x1ae   :  { %316 = vst [vmem:[#allocation3 + $0x20] sm:$0xff] %v315_v21 }
 0x1af   :  { %v331_v26 = vsel %vm329_vm12, %v1667_v24, %v1976_v61  ;;  %v330_v27 = vsel %vm329_vm12, %v1666_v25, %v1667_v24  ;;  %v1676_v24 = vunpack.i.l.bf16 %v2049_v23 }
 0x1b0   :  { %v335_v28 = vsel %vm1986_vm2, %v331_v26, 0.0  ;;  %v334_v29 = vsel %vm1992_vm3, %v330_v27, 0.0 }
 0x1b1   :  { %v336_v30 = vpack.c.bf16 %v335_v28, %v334_v29  ;;  %v1655_v31 = vpop.permute.xlu0 %1654 }
 0x1b2   :  { %v1657_v32 = vunpack.i.h.bf16 %v1655_v31  ;;  %v1656_v33 = vunpack.i.l.bf16 %v1655_v31 }
 0x1b3   :  { %337 = vst [vmem:[#allocation3 + $0x28] sm:$0xff] %v336_v30  ;;  %v1576_v30 = vld [vmem:[#allocation3 + $0x4c] sm:$0xf0] }
 0x1b4   :  { %v493_v34 = vsel %vm2306_vm13, %v1657_v32, %v1978_v0  ;;  %v492_v35 = vsel %vm2306_vm13, %v1656_v33, %v1657_v32  ;;  %v370_v61 = vpop.permute.xlu1 %369  ;;  %v390_v36 = vpop.permute.xlu2 %389  ;;  %vm2309_vm13 = vcmask 637952   ;;  %v245_v32 = vsel %vm244_vm5, %v1676_v24, %v1677_v22 }
 0x1b5   :  { %v497_v37 = vsel %vm1935_vm15, %v493_v34, 0.0  ;;  %v496_v38 = vsel %vm1929_vm14, %v492_v35, 0.0  ;;  %v392_v57 = vrot.slane %v390_v36, 4  ;;  %v1466_v34 = vld [vmem:[#allocation3 + $0x50] sm:$0xf0] }
 0x1b6   :  { %v498_v39 = vpack.c.bf16 %v497_v37, %v496_v38 }
 0x1b8   :  { %499 = vst [vmem:[#allocation3 + $0x68] sm:$0xff] %v498_v39  ;;  %v1448_v39 = vld [vmem:[#allocation3 + $0x20] sm:$0xf] }
 0x1b9   :  { %v508_v40 = vpop.permute.xlu0 %507 }
 0x1ba   :  { %v511_v44 = vrot.slane %v508_v40, 4 }
 0x1bc   :  { %v510_v42 = vpop.permute.xlu1 %509  ;;  %v526_v43 = vpop.permute.xlu2 %525 }
 0x1bd   :  { %v512_v0 = vrot.slane %v510_v42, 4  ;;  %v529_v45 = vrot.slane %v526_v43, 4 }
 0x1bf   :  { %v513_v46 = vsel %vm266_vm6, %v511_v44, %v512_v0  ;;  %v531_v48 = vsel %vm266_vm6, %v529_v45, %v530_v41  ;;  %v1488_v6 = vld [vmem:[#allocation3 + $0x68] sm:$0xf]  ;;  %v1579_v7 = vld [vmem:[#allocation3 + $0x6c] sm:$0xf]  ;;  %v249_v41 = vsel %vm1929_vm14, %v245_v32, 0.0 }
 0x1c0   :  { %v515_v50 = vsel %vm514_vm11, %v508_v40, %v513_v46  ;;  %v533_v51 = vsel %vm2308_vm10, %v526_v43, %v531_v48  ;;  %vm2311_vm10 = vcmask 629760   ;;  %v1570_v40 = vld [vmem:[#allocation3 + $0x24] sm:$0xf]  ;;  %v1572_v43 = vld [vmem:[#allocation3 + $0x2c] sm:$0xf0] }
 0x1c1   :  { %517 = vst [vmem:[#allocation3 + $0x70] sm:$0xff] %v515_v50  ;;  %v1670_v52 = vpop.permute.xlu0 %1669  ;;  %v1450_v44 = vld [vmem:[#allocation3 + $0x30] sm:$0xf0]  ;;  %v1577_v46 = vld [vmem:[#allocation3 + $0x54] sm:$0xf0] }
 0x1c2   :  { %535 = vst [vmem:[#allocation3 + $0x78] sm:$0xff] %v533_v51  ;;  %v1672_v14 = vunpack.i.h.bf16 %v1670_v52  ;;  %v1671_v53 = vunpack.i.l.bf16 %v1670_v52  ;;  %v1474_v48 = vld [vmem:[#allocation3 + $0x58] sm:$0xf0]  ;;  %v1449_v52 = vor.u32 %v1572_v43, %v1448_v39 }
 0x1c4   :  { %v372_v54 = vsel %vm2309_vm13, %v1671_v53, %v1672_v14  ;;  %v373_v55 = vsel %vm2309_vm13, %v1672_v14, %v370_v61  ;;  %v388_v56 = vpop.permute.xlu1 %387  ;;  %v263_v10 = vpop.permute.xlu2 %262  ;;  %vm2310_vm13 = vcmask 1039360   ;;  %v1453_v14 = vor.u32 %v1570_v40, %v1450_v44 }
 0x1c5   :  { %v376_v58 = vsel %vm1929_vm14, %v372_v54, 0.0  ;;  %v377_v59 = vsel %vm1935_vm15, %v373_v55, 0.0  ;;  %v391_v60 = vrot.slane %v388_v56, 4  ;;  %v265_v26 = vrot.slane %v263_v10, 4  ;;  %v1571_v10 = vld [vmem:[#allocation3 + $0x2c] sm:$0xf] }
 0x1c6   :  { %v378_v62 = vpack.c.bf16 %v377_v59, %v376_v58  ;;  %v1432_v58 = vld [vmem:[#allocation3] sm:$0xf] }
 0x1c7   :  { %v393_v1 = vsel %vm266_vm6, %v391_v60, %v392_v57 }
 0x1c8   :  { %379 = vst [vmem:[#allocation3 + $0x38] sm:$0xff] %v378_v62  ;;  %v395_v9 = vsel %vm2314_vm9, %v388_v56, %v393_v1  ;;  %v1580_v11 = vld [vmem:[#allocation3 + $0x6c] sm:$0xf0]  ;;  %v1482_v12 = vld [vmem:[#allocation3 + $0x70] sm:$0xf0] }
 0x1c9   :  { %397 = vst [vmem:[#allocation3 + $0x40] sm:$0xff] %v395_v9  ;;  %v406_v15 = vpop.permute.xlu0 %405  ;;  %v1481_v16 = vor.u32 %v1580_v11, %v1480_v63  ;;  %v1485_v17 = vor.u32 %v1578_v4, %v1482_v12  ;;  %v1581_v18 = vld [vmem:[#allocation3 + $0x74] sm:$0xf0]  ;;  %v1490_v19 = vld [vmem:[#allocation3 + $0x78] sm:$0xf0] }
 0x1ca   :  { %v409_v20 = vrot.slane %v406_v15, 4  ;;  %v1489_v2 = vor.u32 %v1581_v18, %v1488_v6  ;;  %v1493_v21 = vor.u32 %v1579_v7, %v1490_v19  ;;  %v1566_v1 = vld [vmem:[#allocation3 + $0x4] sm:$0xf]  ;;  %v1456_v9 = vld [vmem:[#allocation3 + $0x28] sm:$0xf] }
 0x1cb   :  { %706 = vmatpush.bf16.msra.mxu2 %v1481_v16  ;;  %719 = vmatpush.bf16.msra.mxu3 %v1485_v17 }
 0x1cc   :  { %v411_v25 = vsel %vm266_vm6, %v409_v20, %v410_v13  ;;  %732 = vmatpush.bf16.msrb.mxu0 %v1489_v2  ;;  %745 = vmatpush.bf16.msrb.mxu1 %v1493_v21  ;;  %v261_v3 = vpop.permute.xlu1 %260  ;;  %v282_v37 = vpop.permute.xlu2 %281  ;;  %v190_v13 = vld [vmem:[%s2297_s3] sm:$0xf] }
 0x1cd   :  { %v413_v27 = vsel %vm2311_vm10, %v406_v15, %v411_v25  ;;  %v264_v28 = vrot.slane %v261_v3, 4  ;;  %v284_v50 = vrot.slane %v282_v37, 4  ;;  %vm2312_vm10 = vcmask 588800  }
 0x1ce   :  { %415 = vst [vmem:[#allocation3 + $0x48] sm:$0xff] %v413_v27 }
 0x1cf   :  { %v267_v29 = vsel %vm266_vm6, %v264_v28, %v265_v26  ;;  %v1573_v59 = vld [vmem:[#allocation3 + $0x34] sm:$0xf0]  ;;  %v1458_v60 = vld [vmem:[#allocation3 + $0x38] sm:$0xf0] }
 0x1d0   :  { %v269_v31 = vsel %vm2310_vm13, %v261_v3, %v267_v29  ;;  %v1464_v33 = vld [vmem:[#allocation3 + $0x40] sm:$0xf]  ;;  %v1574_v23 = vld [vmem:[#allocation3 + $0x44] sm:$0xf]  ;;  %vm2313_vm13 = vcmask 760832   ;;  %v1457_v11 = vor.u32 %v1573_v59, %v1456_v9  ;;  %v1461_v12 = vor.u32 %v1571_v10, %v1458_v60 }
 0x1d1   :  { %271 = vst [vmem:[#allocation3 + $0x10] sm:$0xff] %v269_v31  ;;  %v243_v35 = vpop.permute.xlu0 %242  ;;  %v1465_v61 = vor.u32 %v1576_v30, %v1464_v33  ;;  %v1469_v36 = vor.u32 %v1574_v23, %v1466_v34 }
 0x1d2   :  { %v246_v38 = vsel %vm244_vm5, %v1677_v22, %v243_v35 }
 0x1d3   :  { %v250_v42 = vsel %vm1935_vm15, %v246_v38, 0.0  ;;  %707 = vmatpush.bf16.msra.mxu2 %v1465_v61  ;;  %720 = vmatpush.bf16.msra.mxu3 %v1469_v36  ;;  %v1816_v36 = vmov 512.0  }
 0x1d4   :  { %v251_v0 = vpack.c.bf16 %v250_v42, %v249_v41  ;;  %v280_v45 = vpop.permute.xlu1 %279  ;;  %1736 = vrcp.f32 %v1816_v36  ;;  %v1817_v41 = vmov 0  }
 0x1d5   :  { %v283_v51 = vrot.slane %v280_v45, 4  ;;  %v1472_v53 = vld [vmem:[#allocation3 + $0x48] sm:$0xf]  ;;  %v1575_v54 = vld [vmem:[#allocation3 + $0x4c] sm:$0xf]  ;;  %1678 = vset.pattern.permute.xlu2 %v1817_v41  ;;  %1734 = vset.pattern.permute.xlu1 %v1817_v41 }
 0x1d6   :  { %252 = vst [vmem:[#allocation3 + $0x8] sm:$0xff] %v251_v0  ;;  %v1473_v55 = vor.u32 %v1577_v46, %v1472_v53  ;;  %v1477_v56 = vor.u32 %v1575_v54, %v1474_v48  ;;  %1735 = vset.pattern.permute.xlu0 %v1817_v41 }
 0x1d7   :  { %v285_v57 = vsel %vm266_vm6, %v283_v51, %v284_v50  ;;  %708 = vmatpush.bf16.msra.mxu2 %v1449_v52  ;;  %721 = vmatpush.bf16.msra.mxu3 %v1453_v14 }
 0x1d8   :  { %v287_v62 = vsel %vm2313_vm13, %v280_v45, %v285_v57  ;;  %733 = vmatpush.bf16.msrb.mxu0 %v1473_v55  ;;  %746 = vmatpush.bf16.msrb.mxu1 %v1477_v56  ;;  %v1568_v63 = vld [vmem:[#allocation3 + $0xc] sm:$0xf0]  ;;  %v1434_v4 = vld [vmem:[#allocation3 + $0x10] sm:$0xf0]  ;;  %v191_v57 = vld [vmem:[%s2298_s4] sm:$0xff] }
 0x1d9   :  { %289 = vst [vmem:[#allocation3 + $0x18] sm:$0xff] %v287_v62  ;;  %v1433_v6 = vor.u32 %v1568_v63, %v1432_v58  ;;  %v1437_v7 = vor.u32 %v1566_v1, %v1434_v4  ;;  %v192_v63 = vld [vmem:[%s2299_s5] sm:$0xff] }
 0x1da   :  { %v1737_v37 = vpop.eup %1736 }
 0x1db   :  { %709 = vmatpush.bf16.msra.mxu2 %v1433_v6  ;;  %722 = vmatpush.bf16.msra.mxu3 %v1437_v7  ;;  %v760_v38 = vmul.f32 512.0, %v1737_v37 }
 0x1dc   :  { %734 = vmatpush.bf16.msrb.mxu0 %v1457_v11  ;;  %747 = vmatpush.bf16.msrb.mxu1 %v1461_v12 }
 0x1dd   :  { %v1440_v15 = vld [vmem:[#allocation3 + $0x8] sm:$0xf]  ;;  %v1567_v17 = vld [vmem:[#allocation3 + $0xc] sm:$0xf]  ;;  %v761_v39 = vsub.f32 1.0, %v760_v38 }
 0x1de   :  { %1494 = vmatmul.msk.bf16.vlgmr.msra.gmra.mxu2 %vm2312_vm10, %v190_v13  ;;  %1495 = vmatmul.msk.bf16.vlgmr.msra.gmra.mxu3 %vm2312_vm10, %v190_v13 }
 0x1df   :  { %v762_v40 = vmul.f32 %v1737_v37, %v761_v39 }
 0x1e0   :  { %v1569_v16 = vld [vmem:[#allocation3 + $0x14] sm:$0xf0]  ;;  %v1442_v18 = vld [vmem:[#allocation3 + $0x18] sm:$0xf0] }
 0x1e1   :  { %v1441_v19 = vor.u32 %v1569_v16, %v1440_v15  ;;  %v1445_v20 = vor.u32 %v1567_v17, %v1442_v18  ;;  %v763_v42 = vadd.f32 %v1737_v37, %v762_v40 }
 0x1e3   :  { %735 = vmatpush.bf16.msrb.mxu0 %v1441_v19  ;;  %748 = vmatpush.bf16.msrb.mxu1 %v1445_v20 }
 0x1e6   :  { %1496 = vmatmul.msk.bf16.vlgmr.msrb.gmra.mxu0 %vm2312_vm10, %v190_v13  ;;  %1497 = vmatmul.msk.bf16.vlgmr.msrb.gmra.mxu1 %vm2312_vm10, %v190_v13  ;;  %vm764_vm10 = vweird.f32 %v1737_v37 }
 0x1e7   :  { %v2115_v43 = vsel %vm764_vm10, %v1737_v37, %v763_v42 }
 0x261   :  { %v711_v2 = vpop.f32.mrf.mxu2  ;;  %v2100_v21 = vpop.f32.mrf.mxu3 }
 0x262   :  { %v767_v22 = vmul.f32 %v711_v2, %v711_v2  ;;  %v754_v24 = vadd.f32 %v2100_v21, %v711_v2  ;;  %v768_v25 = vmul.f32 %v2100_v21, %v2100_v21 }
 0x263   :  { %v2105_v3 = vpop.f32.mrf.mxu0  ;;  %v2107_v26 = vpop.f32.mrf.mxu1 }
 0x264   :  { %v769_v27 = vmul.f32 %v2105_v3, %v2105_v3  ;;  %v755_v28 = vadd.f32 %v754_v24, %v2105_v3  ;;  %v770_v29 = vmul.f32 %v2107_v26, %v2107_v26  ;;  %v771_v30 = vadd.f32 %v768_v25, %v767_v22 }
 0x266   :  { %v756_v31 = vadd.f32 %v755_v28, %v2107_v26  ;;  %v772_v32 = vadd.f32 %v771_v30, %v769_v27 }
 0x268   :  { %757 = vadd.xlane.f32.xlu0 %v756_v31  ;;  %v773_v33 = vadd.f32 %v772_v32, %v770_v29 }
 0x269   :  { %v713_v23 = vpop.f32.mrf.mxu2  ;;  %v726_v34 = vpop.f32.mrf.mxu3 }
 0x26a   :  { %774 = vadd.xlane.f32.xlu1 %v773_v33 }
 0x26b   :  { %v739_v35 = vpop.f32.mrf.mxu0  ;;  %v752_v61 = vpop.f32.mrf.mxu1 }
 0x2db   :  { %v758_v44 = vpop.xlane.xlu0 %757 }
 0x2dc   :  { %v766_v0 = vmul.f32 %v2115_v43, %v758_v44 }
 0x2dd   :  { %v775_v45 = vpop.xlane.xlu1 %774 }
 0x2de   :  { %v777_v46 = vmul.f32 %v766_v0, %v766_v0  ;;  %v776_v48 = vmul.f32 %v775_v45, %v2115_v43 }
 0x2e0   :  { %v778_v50 = vsub.f32 %v776_v48, %v777_v46 }
 0x2e2   :  { %v779_v51 = vmax.f32 %v778_v50, 0.0 }
 0x2e4   :  { %v780_v52 = vadd.f32 1e-05, %v779_v51 }
 0x2e6   :  { %1738 = vrsqrt.f32 %v780_v52  ;;  %vm787_vm9 = vweird.f32 %v780_v52 }
 0x2ec   :  { %v1739_v14 = vpop.eup %1738 }
 0x2ed   :  { %v782_v53 = vmul.f32 %v1739_v14, %v780_v52  ;;  %vm788_vm13 = vweird.f32 %v1739_v14 }
 0x2ee   :  { %vm789_vm10 = vmor %vm787_vm9, %vm788_vm13  ;;  %vm826_vm9 = vcmask 1047688   ;;  %vm840_vm13 = vcmask 1047960  }
 0x2ef   :  { %v783_v54 = vmul.f32 %v1739_v14, %v782_v53 }
 0x2f1   :  { %v784_v55 = vmul.f32 0.5, %v783_v54 }
 0x2f3   :  { %v785_v56 = vsub.f32 1.5, %v784_v55 }
 0x2f5   :  { %v786_v58 = vmul.f32 %v1739_v14, %v785_v56 }
 0x2f7   :  { %v790_v59 = vsel %vm789_vm10, %v1739_v14, %v786_v58  ;;  %vm2329_vm10 = vcmask 621568  }
 0x2f8   :  { %v791_v60 = vmul.f32 %v790_v59, %v191_v57 }
 0x2fa   :  { %796 = vperm.xlu2 %1678, %v791_v60   ;;  %v792_v62 = vmul.f32 %v791_v60, %v766_v0 }
 0x2fc   :  { %v793_v1 = vsub.f32 %v192_v63, %v792_v62 }
 0x302   :  { %805 = vperm.xlu2 %1678, %v793_v1  }
 0x354   :  { %v797_v4 = vpop.permute.xlu2 %796 }
 0x355   :  { %v799_v6 = vmul.f32 %v797_v4, %v711_v2  ;;  %v800_v11 = vmul.f32 %v797_v4, %v2100_v21  ;;  %v801_v15 = vmul.f32 %v797_v4, %v2105_v3  ;;  %v802_v18 = vmul.f32 %v797_v4, %v2107_v26 }
 0x35c   :  { %v806_v7 = vpop.permute.xlu2 %805 }
 0x35d   :  { %v808_v9 = vadd.f32 %v806_v7, %v799_v6  ;;  %v809_v12 = vadd.f32 %v806_v7, %v800_v11  ;;  %v810_v16 = vadd.f32 %v806_v7, %v801_v15  ;;  %v811_v19 = vadd.f32 %v806_v7, %v802_v18 }
 0x35f   :  { %v812_v10 = vmax.f32 %v808_v9, 0.0  ;;  %v813_v13 = vmax.f32 %v809_v12, 0.0  ;;  %v814_v17 = vmax.f32 %v810_v16, 0.0  ;;  %v815_v20 = vmax.f32 %v811_v19, 0.0 }
 0x361   :  { %818 = vrot.lane.b32.xlu2 %v812_v10, %s1797_s17 }
 0x369   :  { %820 = vrot.lane.b32.xlu2 %v813_v13, %s1797_s17 }
 0x371   :  { %832 = vrot.lane.b32.xlu2 %v814_v17, %s1798_s20 }
 0x379   :  { %834 = vrot.lane.b32.xlu2 %v815_v20, %s1798_s20 }
 0x3bb   :  { %v819_v2 = vpop.permute.xlu2 %818 }
 0x3bc   :  { %827 = vst.msk [vmem:[#allocation4] sm:$0xff] %vm826_vm9, %v819_v2  ;;  %vm2330_vm9 = vmmov %vm2329_vm10 }
 0x3c3   :  { %v847_v21 = vld [vmem:[#allocation4] sm:$0xff]  ;;  %v821_v22 = vpop.permute.xlu2 %820 }
 0x3c4   :  { %v849_v24 = vsel %vm1929_vm14, %v847_v21, 0.0  ;;  %v822_v25 = vsel %vm50_vm1, %v819_v2, %v821_v22  ;;  %829 = vst.msk [vmem:[#allocation4 + $0x10] sm:$0xff] %vm50_vm1, %v821_v22  ;;  %vm2323_vm1 = vcmask 1031168  }
 0x3c5   :  { %v850_v3 = vsel %vm1935_vm15, %v822_v25, 0.0  ;;  %v1104_v26 = vpack.c.bf16 %v822_v25, %v847_v21  ;;  %v1684_v32 = vpack.i.bf16 %v822_v25, %v847_v21 }
 0x3c6   :  { %v851_v27 = vpack.c.bf16 %v850_v3, %v849_v24 }
 0x3c8   :  { %852 = vst [vmem:[#allocation5] sm:$0xff] %v851_v27 }
 0x3cb   :  { %v833_v28 = vpop.permute.xlu2 %832 }
 0x3cc   :  { %841 = vst.msk [vmem:[#allocation4 + $0x10] sm:$0xff] %vm840_vm13, %v833_v28 }
 0x3d3   :  { %v835_v29 = vpop.permute.xlu2 %834  ;;  %v1137_v33 = vld [vmem:[#allocation4 + $0x10] sm:$0xff] }
 0x3d4   :  { %v836_v30 = vsel %vm89_vm8, %v833_v28, %v835_v29  ;;  %843 = vst.msk [vmem:[#allocation4 + $0x20] sm:$0xff] %vm89_vm8, %v835_v29  ;;  %v991_v35 = vpack.c.bf16 %v1137_v33, %v1137_v33  ;;  %vm2324_vm8 = vcmask 916480  }
 0x3d5   :  { %v1689_v23 = vpack.i.bf16 %v836_v30, %v1137_v33  ;;  %v1121_v61 = vpack.c.bf16 %v836_v30, %v1137_v33 }
 0x3db   :  { %v1157_v31 = vld [vmem:[#allocation4 + $0x20] sm:$0xff] }
 0x3dc   :  { %1165 = vrot.lane.b32.xlu0 %v1157_v31, %s1800_s0  ;;  %1091 = vrot.lane.b32.xlu2 %v1157_v31, %s1801_s1  ;;  %v1122_v34 = vpack.c.bf16 %v1157_v31, %v1157_v31 }
 0x3dd   :  { %937 = vrot.lane.b32.xlu1 %v1157_v31, %s1802_s27 }
 0x3e4   :  { %1685 = vrot.lane.b32.xlu2 %v1684_v32, %s1807_s11  ;;  %1051 = vrot.lane.b32.xlu0 %v1157_v31, %s1803_s28 }
 0x3e5   :  { %1145 = vrot.lane.b32.xlu1 %v1137_v33, %s1806_s10 }
 0x3ec   :  { %1071 = vrot.lane.b32.xlu2 %v1137_v33, %s1807_s11  ;;  %1680 = vrot.lane.b32.xlu0 %v1684_v32, %s1806_s10 }
 0x3ed   :  { %1690 = vrot.lane.b32.xlu1 %v1689_v23, %s1800_s0 }
 0x3f4   :  { %1031 = vrot.lane.b32.xlu2 %v1137_v33, %s1808_s12  ;;  %1695 = vrot.lane.b32.xlu0 %v1684_v32, %s1808_s12 }
 0x3f5   :  { %1700 = vrot.lane.b32.xlu1 %v1684_v32, %s1810_s2 }
 0x3fc   :  { %1705 = vrot.lane.b32.xlu2 %v1684_v32, %s1809_s13  ;;  %917 = vrot.lane.b32.xlu0 %v1137_v33, %s1810_s2 }
 0x3fd   :  { %957 = vrot.lane.b32.xlu1 %v1137_v33, %s1809_s13 }
 0x404   :  { %1710 = vrot.lane.b32.xlu0 %v1689_v23, %s1801_s1  ;;  %1720 = vrot.lane.b32.xlu2 %v1689_v23, %s1802_s27 }
 0x405   :  { %1715 = vrot.lane.b32.xlu1 %v1689_v23, %s1803_s28 }
 0x40c   :  { %1127 = vrot.lane.b32.xlu0 %v1122_v34, %s1805_s30  ;;  %1013 = vrot.lane.b32.xlu2 %v1122_v34, %s1804_s29 }
 0x40d   :  { %1730 = vrot.lane.b32.xlu1 %v1689_v23, %s1806_s10 }
 0x414   :  { %1108 = vrot.lane.b32.xlu0 %v1104_v26, %s1812_s18  ;;  %977 = vrot.lane.b32.xlu2 %v1157_v31, %s1811_s16 }
 0x415   :  { %996 = vrot.lane.b32.xlu1 %v991_v35, %s1813_s19 }
 0x41c   :  { %1725 = vrot.lane.b32.xlu0 %v1689_v23, %s1811_s16  ;;  %1110 = vrot.lane.b32.xlu2 %v991_v35, %s1812_s18 }
 0x41d   :  { %1125 = vrot.lane.b32.xlu1 %v1121_v61, %s1805_s30 }
 0x424   :  { %1011 = vrot.lane.b32.xlu0 %v1121_v61, %s1804_s29  ;;  %994 = vrot.lane.b32.xlu2 %v1104_v26, %s1813_s19 }
 0x425   :  { %882 = vrot.lane.b32.xlu1 %v991_v35, %s1814_s21 }
 0x42c   :  { %863 = vrot.lane.b32.xlu0 %v1157_v31, %s1806_s10  ;;  %880 = vrot.lane.b32.xlu2 %v1104_v26, %s1814_s21 }
 0x42d   :  { %899 = vrot.lane.b32.xlu1 %v1122_v34, %s1815_s22 }
 0x434   :  { %897 = vrot.lane.b32.xlu2 %v1121_v61, %s1815_s22 }
 0x436   :  { %v2174_v36 = vpop.permute.xlu2 %1091 }
 0x43e   :  { %v1686_v37 = vpop.permute.xlu2 %1685 }
 0x43f   :  { %v1688_v38 = vunpack.i.h.bf16 %v1686_v37  ;;  %v1687_v39 = vunpack.i.l.bf16 %v1686_v37 }
 0x441   :  { %v1073_v40 = vsel %vm470_vm4, %v1687_v39, %v1688_v38 }
 0x442   :  { %v1077_v44 = vsel %vm1929_vm14, %v1073_v40, 0.0 }
 0x446   :  { %v1072_v41 = vpop.permute.xlu2 %1071 }
 0x447   :  { %v1074_v42 = vsel %vm470_vm4, %v1688_v38, %v1072_v41  ;;  %vm2326_vm4 = vmmov %vm2324_vm8 }
 0x448   :  { %v1078_v0 = vsel %vm1935_vm15, %v1074_v42, 0.0 }
 0x449   :  { %v1079_v45 = vpack.c.bf16 %v1078_v0, %v1077_v44 }
 0x44b   :  { %1080 = vst [vmem:[#allocation5 + $0x60] sm:$0xff] %v1079_v45 }
 0x44e   :  { %v1166_v46 = vpop.permute.xlu0 %1165  ;;  %v1032_v48 = vpop.permute.xlu2 %1031 }
 0x44f   :  { %v938_v50 = vpop.permute.xlu1 %937 }
 0x456   :  { %v2182_v51 = vpop.permute.xlu2 %1705  ;;  %v2184_v52 = vpop.permute.xlu0 %1051 }
 0x457   :  { %v1146_v14 = vpop.permute.xlu1 %1145  ;;  %v1708_v25 = vunpack.i.h.bf16 %v2182_v51  ;;  %v1707_v37 = vunpack.i.l.bf16 %v2182_v51 }
 0x45e   :  { %v1681_v53 = vpop.permute.xlu0 %1680  ;;  %v1721_v54 = vpop.permute.xlu2 %1720 }
 0x45f   :  { %v1683_v55 = vunpack.i.h.bf16 %v1681_v53  ;;  %v1682_v56 = vunpack.i.l.bf16 %v1681_v53  ;;  %v1691_v57 = vpop.permute.xlu1 %1690  ;;  %v1723_v58 = vunpack.i.h.bf16 %v1721_v54  ;;  %v1722_v59 = vunpack.i.l.bf16 %v1721_v54 }
 0x460   :  { %v1693_v60 = vunpack.i.h.bf16 %v1691_v57  ;;  %v1692_v62 = vunpack.i.l.bf16 %v1691_v57 }
 0x461   :  { %v1147_v63 = vsel %vm244_vm5, %v1682_v56, %v1683_v55  ;;  %v1148_v1 = vsel %vm244_vm5, %v1683_v55, %v1146_v14  ;;  %v940_v4 = vsel %vm329_vm12, %v1723_v58, %v938_v50  ;;  %v939_v6 = vsel %vm329_vm12, %v1722_v59, %v1723_v58 }
 0x462   :  { %v1151_v7 = vsel %vm1992_vm3, %v1147_v63, 0.0  ;;  %v1152_v9 = vsel %vm1986_vm2, %v1148_v1, 0.0  ;;  %v1168_v10 = vsel %vm568_vm0, %v1693_v60, %v1166_v46  ;;  %v1167_v11 = vsel %vm568_vm0, %v1692_v62, %v1693_v60  ;;  %vm2325_vm0 = vmmov %vm2323_vm1 }
 0x463   :  { %v1153_v12 = vpack.c.bf16 %v1152_v9, %v1151_v7  ;;  %v1172_v13 = vsel %vm1986_vm2, %v1168_v10, 0.0  ;;  %v1171_v15 = vsel %vm1992_vm3, %v1167_v11, 0.0  ;;  %v944_v16 = vsel %vm1986_vm2, %v940_v4, 0.0 }
 0x464   :  { %v1173_v17 = vpack.c.bf16 %v1172_v13, %v1171_v15  ;;  %v943_v18 = vsel %vm1992_vm3, %v939_v6, 0.0  ;;  %v959_v46 = vsel %vm2324_vm8, %v1707_v37, %v1708_v25  ;;  %vm2336_vm8 = vcmask 1039360  }
 0x465   :  { %v945_v19 = vpack.c.bf16 %v944_v16, %v943_v18  ;;  %v1243_v20 = vunpack.c.l.b16 %v1153_v12  ;;  %v1244_v2 = vunpack.c.h.b16 %v1153_v12  ;;  %v963_v55 = vsel %vm1929_vm14, %v959_v46, 0.0 }
 0x466   :  { %v1696_v21 = vpop.permute.xlu0 %1695  ;;  %v1245_v22 = vunpack.c.l.b16 %v1173_v17  ;;  %v1246_v24 = vunpack.c.h.b16 %v1173_v17  ;;  %v2205_v28 = vpop.permute.xlu2 %1013 }
 0x467   :  { %946 = vst [vmem:[#allocation5 + $0x28] sm:$0xff] %v945_v19  ;;  %v1698_v3 = vunpack.i.h.bf16 %v1696_v21  ;;  %v1697_v26 = vunpack.i.l.bf16 %v1696_v21  ;;  %v1701_v27 = vpop.permute.xlu1 %1700  ;;  %v1263_v29 = vpack.c.b16 %v1243_v20, %v1243_v20  ;;  %v1264_v32 = vpack.c.b16 %v1244_v2, %v1244_v2 }
 0x468   :  { %v1703_v30 = vunpack.i.h.bf16 %v1701_v27  ;;  %v1702_v31 = vunpack.i.l.bf16 %v1701_v27  ;;  %v1265_v33 = vpack.c.b16 %v1245_v22, %v1245_v22  ;;  %v1266_v61 = vpack.c.b16 %v1246_v24, %v1246_v24 }
 0x469   :  { %v1034_v23 = vsel %vm428_vm7, %v1698_v3, %v1032_v48  ;;  %v1033_v34 = vsel %vm428_vm7, %v1697_v26, %v1698_v3  ;;  %v1287_v35 = vsel %vm266_vm6, %v1263_v29, 0  ;;  %v1290_v40 = vsel %vm266_vm6, %v1264_v32, 0 }
 0x46a   :  { %v1038_v38 = vsel %vm1986_vm2, %v1034_v23, 0.0  ;;  %v1037_v39 = vsel %vm1992_vm3, %v1033_v34, 0.0  ;;  %1301 = vmatpush.bf16.msrb.mxu2 %v1287_v35  ;;  %1314 = vmatpush.bf16.msrb.mxu3 %v1290_v40  ;;  %v1293_v42 = vsel %vm266_vm6, %v1265_v33, 0  ;;  %v1296_v44 = vsel %vm266_vm6, %v1266_v61, 0  ;;  %v1548_v35 = vld [vmem:[#allocation5 + $0x60] sm:$0xf] }
 0x46b   :  { %v1039_v41 = vpack.c.bf16 %v1038_v38, %v1037_v39  ;;  %1327 = vmatpush.bf16.msra.mxu0 %v1293_v42  ;;  %1340 = vmatpush.bf16.msra.mxu1 %v1296_v44  ;;  %v919_v0 = vsel %vm2323_vm1, %v1702_v31, %v1703_v30  ;;  %vm2327_vm7 = vcmask 506880   ;;  %v1594_v61 = vld [vmem:[#allocation5 + $0x64] sm:$0xf]  ;;  %vm2335_vm1 = vcmask 629760  }
 0x46c   :  { %v923_v51 = vsel %vm1992_vm3, %v919_v0, 0.0  ;;  %vm2328_vm12 = vmmov %vm2327_vm7 }
 0x46d   :  { %1040 = vst [vmem:[#allocation5 + $0x50] sm:$0xff] %v1039_v41 }
 0x46e   :  { %v918_v45 = vpop.permute.xlu0 %917  ;;  %v978_v57 = vpop.permute.xlu2 %977 }
 0x46f   :  { %v920_v48 = vsel %vm2325_vm0, %v1703_v30, %v918_v45  ;;  %v958_v50 = vpop.permute.xlu1 %957 }
 0x470   :  { %v924_v14 = vsel %vm1986_vm2, %v920_v48, 0.0  ;;  %v960_v53 = vsel %vm2326_vm4, %v1708_v25, %v958_v50 }
 0x471   :  { %v925_v54 = vpack.c.bf16 %v924_v14, %v923_v51  ;;  %v964_v56 = vsel %vm1935_vm15, %v960_v53, 0.0 }
 0x472   :  { %v965_v58 = vpack.c.bf16 %v964_v56, %v963_v55 }
 0x473   :  { %926 = vst [vmem:[#allocation5 + $0x20] sm:$0xff] %v925_v54  ;;  %v1016_v54 = vrot.slane %v2205_v28, 4 }
 0x474   :  { %966 = vst [vmem:[#allocation5 + $0x30] sm:$0xff] %v965_v58  ;;  %v1592_v14 = vld [vmem:[#allocation5 + $0x4c] sm:$0xf0]  ;;  %v1534_v53 = vld [vmem:[#allocation5 + $0x50] sm:$0xf0] }
 0x476   :  { %v1711_v59 = vpop.permute.xlu0 %1710  ;;  %v1111_v16 = vpop.permute.xlu2 %1110 }
 0x477   :  { %v1713_v60 = vunpack.i.h.bf16 %v1711_v59  ;;  %v1712_v62 = vunpack.i.l.bf16 %v1711_v59  ;;  %v1716_v63 = vpop.permute.xlu1 %1715  ;;  %v1113_v21 = vrot.slane %v1111_v16, 4 }
 0x478   :  { %v1718_v1 = vunpack.i.h.bf16 %v1716_v63  ;;  %v1717_v4 = vunpack.i.l.bf16 %v1716_v63 }
 0x479   :  { %v1094_v6 = vsel %vm2327_vm7, %v1713_v60, %v2174_v36  ;;  %v1093_v7 = vsel %vm2328_vm12, %v1712_v62, %v1713_v60 }
 0x47a   :  { %v1098_v9 = vsel %vm1935_vm15, %v1094_v6, 0.0  ;;  %v1097_v10 = vsel %vm1929_vm14, %v1093_v7, 0.0  ;;  %v1054_v11 = vsel %vm2329_vm10, %v1718_v1, %v2184_v52  ;;  %v1053_v12 = vsel %vm2330_vm9, %v1717_v4, %v1718_v1  ;;  %v1516_v59 = vld [vmem:[#allocation5 + $0x20] sm:$0xf]  ;;  %v1586_v60 = vld [vmem:[#allocation5 + $0x24] sm:$0xf] }
 0x47b   :  { %v1099_v13 = vpack.c.bf16 %v1098_v9, %v1097_v10  ;;  %v1058_v15 = vsel %vm1986_vm2, %v1054_v11, 0.0  ;;  %v1057_v36 = vsel %vm1992_vm3, %v1053_v12, 0.0  ;;  %vm2331_vm2 = vcmask 908288   ;;  %v1588_v1 = vld [vmem:[#allocation5 + $0x2c] sm:$0xf0] }
 0x47c   :  { %v1059_v17 = vpack.c.bf16 %v1058_v15, %v1057_v36  ;;  %vm2332_vm3 = vcmask 637952   ;;  %v1518_v4 = vld [vmem:[#allocation5 + $0x30] sm:$0xf0]  ;;  %v1517_v15 = vor.u32 %v1588_v1, %v1516_v59 }
 0x47d   :  { %1100 = vst [vmem:[#allocation5 + $0x68] sm:$0xff] %v1099_v13  ;;  %vm2333_vm13 = vmmov %vm2332_vm3  ;;  %v1521_v36 = vor.u32 %v1586_v60, %v1518_v4 }
 0x47e   :  { %1060 = vst [vmem:[#allocation5 + $0x58] sm:$0xff] %v1059_v17  ;;  %v1128_v18 = vpop.permute.xlu0 %1127  ;;  %v995_v20 = vpop.permute.xlu2 %994 }
 0x47f   :  { %v2244_v19 = vpop.permute.xlu1 %1730  ;;  %v998_v24 = vrot.slane %v995_v20, 4  ;;  %v1130_v32 = vrot.slane %v1128_v18, 4 }
 0x480   :  { %v1733_v6 = vunpack.i.h.bf16 %v2244_v19  ;;  %v1732_v7 = vunpack.i.l.bf16 %v2244_v19 }
 0x484   :  { %v1556_v11 = vld [vmem:[#allocation5 + $0x68] sm:$0xf]  ;;  %v1595_v12 = vld [vmem:[#allocation5 + $0x6c] sm:$0xf] }
 0x486   :  { %v1109_v2 = vpop.permute.xlu0 %1108  ;;  %v881_v42 = vpop.permute.xlu2 %880 }
 0x487   :  { %v1112_v52 = vrot.slane %v1109_v2, 4  ;;  %v997_v22 = vpop.permute.xlu1 %996  ;;  %v884_v62 = vrot.slane %v881_v42, 4 }
 0x488   :  { %v999_v25 = vrot.slane %v997_v22, 4 }
 0x489   :  { %v1114_v5 = vsel %vm266_vm6, %v1112_v52, %v1113_v21 }
 0x48a   :  { %v1115_v3 = vsel %vm514_vm11, %v1109_v2, %v1114_v5  ;;  %v1000_v8 = vsel %vm266_vm6, %v998_v24, %v999_v25  ;;  %vm2334_vm11 = vcmask 498688   ;;  %v865_v2 = vsel %vm244_vm5, %v1732_v7, %v1733_v6 }
 0x48b   :  { %1117 = vst [vmem:[#allocation5 + $0x70] sm:$0xff] %v1115_v3  ;;  %v1001_v26 = vsel %vm2331_vm2, %v995_v20, %v1000_v8  ;;  %v869_v25 = vsel %vm1929_vm14, %v865_v2, 0.0 }
 0x48c   :  { %1003 = vst [vmem:[#allocation5 + $0x40] sm:$0xff] %v1001_v26  ;;  %v1500_v26 = vld [vmem:[#allocation5] sm:$0xf] }
 0x48e   :  { %v1726_v27 = vpop.permute.xlu0 %1725  ;;  %v898_v20 = vpop.permute.xlu2 %897 }
 0x48f   :  { %v1728_v29 = vunpack.i.h.bf16 %v1726_v27  ;;  %v1727_v30 = vunpack.i.l.bf16 %v1726_v27  ;;  %v1126_v31 = vpop.permute.xlu1 %1125  ;;  %v901_v24 = vrot.slane %v898_v20, 4  ;;  %v1582_v27 = vld [vmem:[#allocation5 + $0x4] sm:$0xf] }
 0x490   :  { %v1129_v33 = vrot.slane %v1126_v31, 4 }
 0x491   :  { %v979_v23 = vsel %vm2332_vm3, %v1727_v30, %v1728_v29  ;;  %v980_v34 = vsel %vm2333_vm13, %v1728_v29, %v978_v57  ;;  %v1593_v29 = vld [vmem:[#allocation5 + $0x54] sm:$0xf0] }
 0x492   :  { %v983_v37 = vsel %vm1929_vm14, %v979_v23, 0.0  ;;  %v984_v38 = vsel %vm1935_vm15, %v980_v34, 0.0  ;;  %v1131_v39 = vsel %vm266_vm6, %v1129_v33, %v1130_v32  ;;  %v1596_v40 = vld [vmem:[#allocation5 + $0x6c] sm:$0xf0]  ;;  %v1550_v41 = vld [vmem:[#allocation5 + $0x70] sm:$0xf0] }
 0x493   :  { %v985_v44 = vpack.c.bf16 %v984_v38, %v983_v37  ;;  %v1132_v0 = vsel %vm2334_vm11, %v1126_v31, %v1131_v39  ;;  %v1549_v45 = vor.u32 %v1596_v40, %v1548_v35  ;;  %v1553_v46 = vor.u32 %v1594_v61, %v1550_v41  ;;  %v1532_v48 = vld [vmem:[#allocation5 + $0x40] sm:$0xf]  ;;  %v1590_v50 = vld [vmem:[#allocation5 + $0x44] sm:$0xf]  ;;  %v1542_v33 = vld [vmem:[#allocation5 + $0x58] sm:$0xf0] }
 0x494   :  { %1134 = vst [vmem:[#allocation5 + $0x78] sm:$0xff] %v1132_v0  ;;  %v1533_v57 = vor.u32 %v1592_v14, %v1532_v48  ;;  %v1537_v58 = vor.u32 %v1590_v50, %v1534_v53  ;;  %v844_v40 = vld [vmem:[%s2300_s6] sm:$0xf]  ;;  %v1524_v41 = vld [vmem:[#allocation5 + $0x28] sm:$0xf]  ;;  %vm2338_vm14 = vcmask 588800  }
 0x495   :  { %986 = vst [vmem:[#allocation5 + $0x38] sm:$0xff] %v985_v44  ;;  %1302 = vmatpush.bf16.msrb.mxu2 %v1549_v45  ;;  %1315 = vmatpush.bf16.msrb.mxu3 %v1553_v46 }
 0x496   :  { %v1012_v51 = vpop.permute.xlu0 %1011 }
 0x497   :  { %v1015_v55 = vrot.slane %v1012_v51, 4  ;;  %v883_v56 = vpop.permute.xlu1 %882 }
 0x498   :  { %v885_v63 = vrot.slane %v883_v56, 4 }
 0x499   :  { %v1017_v9 = vsel %vm266_vm6, %v1015_v55, %v1016_v54  ;;  %1303 = vmatpush.bf16.msrb.mxu2 %v1533_v57  ;;  %1316 = vmatpush.bf16.msrb.mxu3 %v1537_v58 }
 0x49a   :  { %v1018_v28 = vsel %vm2335_vm1, %v1012_v51, %v1017_v9  ;;  %v886_v10 = vsel %vm266_vm6, %v884_v62, %v885_v63 }
 0x49b   :  { %1020 = vst [vmem:[#allocation5 + $0x48] sm:$0xff] %v1018_v28  ;;  %v887_v13 = vsel %vm2336_vm8, %v881_v42, %v886_v10  ;;  %v1597_v16 = vld [vmem:[#allocation5 + $0x74] sm:$0xf0]  ;;  %v1558_v17 = vld [vmem:[#allocation5 + $0x78] sm:$0xf0] }
 0x49c   :  { %889 = vst [vmem:[#allocation5 + $0x10] sm:$0xff] %v887_v13  ;;  %v1557_v18 = vor.u32 %v1597_v16, %v1556_v11  ;;  %v1561_v19 = vor.u32 %v1595_v12, %v1558_v17  ;;  %v1589_v38 = vld [vmem:[#allocation5 + $0x34] sm:$0xf0]  ;;  %v1526_v39 = vld [vmem:[#allocation5 + $0x38] sm:$0xf0] }
 0x49d   :  { %1304 = vmatpush.bf16.msrb.mxu2 %v1517_v15  ;;  %1317 = vmatpush.bf16.msrb.mxu3 %v1521_v36  ;;  %v1587_v42 = vld [vmem:[#allocation5 + $0x2c] sm:$0xf]  ;;  %v1525_v44 = vor.u32 %v1589_v38, %v1524_v41 }
 0x49e   :  { %1328 = vmatpush.bf16.msra.mxu0 %v1557_v18  ;;  %1341 = vmatpush.bf16.msra.mxu1 %v1561_v19  ;;  %v864_v21 = vpop.permute.xlu0 %863  ;;  %v1529_v0 = vor.u32 %v1587_v42, %v1526_v39 }
 0x49f   :  { %v866_v52 = vsel %vm244_vm5, %v1733_v6, %v864_v21  ;;  %v900_v22 = vpop.permute.xlu1 %899  ;;  %vm2337_vm5 = vcmask 760832  }
 0x4a0   :  { %v870_v5 = vsel %vm1935_vm15, %v866_v52, 0.0  ;;  %v902_v3 = vrot.slane %v900_v22, 4  ;;  %vm2339_vm15 = vmmov %vm2338_vm14 }
 0x4a1   :  { %v871_v8 = vpack.c.bf16 %v870_v5, %v869_v25 }
 0x4a2   :  { %v903_v30 = vsel %vm266_vm6, %v901_v24, %v902_v3  ;;  %v1540_v31 = vld [vmem:[#allocation5 + $0x48] sm:$0xf]  ;;  %v1591_v32 = vld [vmem:[#allocation5 + $0x4c] sm:$0xf]  ;;  %vm2340_vm6 = vmmov %vm2338_vm14 }
 0x4a3   :  { %872 = vst [vmem:[#allocation5 + $0x8] sm:$0xff] %v871_v8  ;;  %v904_v23 = vsel %vm2337_vm5, %v898_v20, %v903_v30  ;;  %v1584_v34 = vld [vmem:[#allocation5 + $0xc] sm:$0xf0]  ;;  %v1502_v35 = vld [vmem:[#allocation5 + $0x10] sm:$0xf0]  ;;  %v1541_v47 = vor.u32 %v1593_v29, %v1540_v31  ;;  %v1545_v61 = vor.u32 %v1591_v32, %v1542_v33  ;;  %vm2341_vm0 = vmmov %vm2340_vm6 }
 0x4a4   :  { %906 = vst [vmem:[#allocation5 + $0x18] sm:$0xff] %v904_v23  ;;  %v1501_v49 = vor.u32 %v1584_v34, %v1500_v26  ;;  %v1505_v37 = vor.u32 %v1582_v27, %v1502_v35  ;;  %v845_v24 = vld [vmem:[%s2301_s7] sm:$0xff]  ;;  %s1818_s7 = smov [#allocation9]  }
 0x4a5   :  { %1329 = vmatpush.bf16.msra.mxu0 %v1541_v47  ;;  %1342 = vmatpush.bf16.msra.mxu1 %v1545_v61  ;;  %v846_v8 = vld [vmem:[%s2302_s8] sm:$0xff]  ;;  %s1413_s1 = sshll.u32 %s1818_s7, 4  ;;  %s1415_s8 = sshll.u32 %s2303_s9, 4  ;;  %s1414_s1 = int_to_ptr.vmem [resolvable:$true] %s1413_s1  ;;  %s1416_s8 = int_to_ptr.hbm [resolvable:$true] %s1415_s8 }
 0x4a6   :  { %1305 = vmatpush.bf16.msrb.mxu2 %v1501_v49  ;;  %1318 = vmatpush.bf16.msrb.mxu3 %v1505_v37 }
 0x4a9   :  { %1562 = vmatmul.msk.bf16.vlgmr.msrb.gmra.mxu2 %vm2338_vm14, %v844_v40  ;;  %1563 = vmatmul.msk.bf16.vlgmr.msrb.gmra.mxu3 %vm2339_vm15, %v844_v40 }
 0x4aa   :  { %1330 = vmatpush.bf16.msra.mxu0 %v1525_v44  ;;  %1343 = vmatpush.bf16.msra.mxu1 %v1529_v0  ;;  %v1508_v45 = vld [vmem:[#allocation5 + $0x8] sm:$0xf]  ;;  %v1583_v46 = vld [vmem:[#allocation5 + $0xc] sm:$0xf] }
 0x4ab   :  { %v1585_v48 = vld [vmem:[#allocation5 + $0x14] sm:$0xf0]  ;;  %v1510_v50 = vld [vmem:[#allocation5 + $0x18] sm:$0xf0] }
 0x4ac   :  { %v1509_v51 = vor.u32 %v1585_v48, %v1508_v45  ;;  %v1513_v14 = vor.u32 %v1583_v46, %v1510_v50 }
 0x4ae   :  { %1331 = vmatpush.bf16.msra.mxu0 %v1509_v51  ;;  %1344 = vmatpush.bf16.msra.mxu1 %v1513_v14 }
 0x4b1   :  { %1564 = vmatmul.msk.bf16.vlgmr.msra.gmra.mxu0 %vm2340_vm6, %v844_v40  ;;  %1565 = vmatmul.msk.bf16.vlgmr.msra.gmra.mxu1 %vm2341_vm0, %v844_v40 }
 0x52c   :  { %v1307_v53 = vpop.f32.mrf.mxu2  ;;  %v1320_v54 = vpop.f32.mrf.mxu3 }
 0x52d   :  { %v1356_v55 = vmul.f32 %v1307_v53, %v1307_v53  ;;  %v1350_v56 = vadd.f32 %v1320_v54, %v1307_v53  ;;  %v1357_v57 = vmul.f32 %v1320_v54, %v1320_v54 }
 0x52e   :  { %v1333_v58 = vpop.f32.mrf.mxu0  ;;  %v1346_v59 = vpop.f32.mrf.mxu1 }
 0x52f   :  { %v1358_v60 = vmul.f32 %v1333_v58, %v1333_v58  ;;  %v1351_v62 = vadd.f32 %v1350_v56, %v1333_v58  ;;  %v1359_v63 = vmul.f32 %v1346_v59, %v1346_v59  ;;  %v1360_v1 = vadd.f32 %v1357_v57, %v1356_v55 }
 0x531   :  { %v1352_v4 = vadd.f32 %v1351_v62, %v1346_v59  ;;  %v1361_v6 = vadd.f32 %v1360_v1, %v1358_v60 }
 0x533   :  { %1353 = vadd.xlane.f32.xlu0 %v1352_v4  ;;  %v1362_v7 = vadd.f32 %v1361_v6, %v1359_v63 }
 0x534   :  { %v1309_v9 = vpop.f32.mrf.mxu2  ;;  %v1322_v28 = vpop.f32.mrf.mxu3 }
 0x535   :  { %1363 = vadd.xlane.f32.xlu2 %v1362_v7 }
 0x536   :  { %v1335_v10 = vpop.f32.mrf.mxu0  ;;  %v1348_v11 = vpop.f32.mrf.mxu1 }
 0x5a6   :  { %v1354_v12 = vpop.xlane.xlu0 %1353 }
 0x5a7   :  { %v1355_v13 = vmul.f32 %v1354_v12, %v2115_v43 }
 0x5a8   :  { %v1364_v15 = vpop.xlane.xlu2 %1363 }
 0x5a9   :  { %v1366_v36 = vmul.f32 %v1355_v13, %v1355_v13  ;;  %v1365_v16 = vmul.f32 %v1364_v15, %v2115_v43 }
 0x5ab   :  { %v1367_v17 = vsub.f32 %v1365_v16, %v1366_v36 }
 0x5ad   :  { %v1368_v18 = vmax.f32 %v1367_v17, 0.0 }
 0x5af   :  { %v1369_v19 = vadd.f32 1e-05, %v1368_v18 }
 0x5b1   :  { %1740 = vrsqrt.f32 %v1369_v19  ;;  %vm1376_vm7 = vweird.f32 %v1369_v19 }
 0x5b7   :  { %v1741_v20 = vpop.eup %1740 }
 0x5b8   :  { %v1371_v2 = vmul.f32 %v1741_v20, %v1369_v19  ;;  %vm1377_vm4 = vweird.f32 %v1741_v20 }
 0x5b9   :  { %vm1378_vm12 = vmor %vm1376_vm7, %vm1377_vm4 }
 0x5ba   :  { %v1372_v21 = vmul.f32 %v1741_v20, %v1371_v2 }
 0x5bc   :  { %v1373_v52 = vmul.f32 0.5, %v1372_v21 }
 0x5be   :  { %v1374_v22 = vsub.f32 1.5, %v1373_v52 }
 0x5c0   :  { %v1375_v25 = vmul.f32 %v1741_v20, %v1374_v22 }
 0x5c2   :  { %v1379_v5 = vsel %vm1378_vm12, %v1741_v20, %v1375_v25 }
 0x5c3   :  { %v1380_v3 = vmul.f32 %v1379_v5, %v845_v24 }
 0x5c5   :  { %1385 = vperm.xlu1 %1734, %v1380_v3   ;;  %v1381_v43 = vmul.f32 %v1380_v3, %v1355_v13 }
 0x5c7   :  { %v1382_v26 = vsub.f32 %v846_v8, %v1381_v43 }
 0x5cd   :  { %1394 = vperm.xlu1 %1734, %v1382_v26  }
 0x637   :  { %v1386_v27 = vpop.permute.xlu1 %1385 }
 0x638   :  { %v1388_v29 = vmul.f32 %v1386_v27, %v1307_v53  ;;  %v1389_v30 = vmul.f32 %v1386_v27, %v1320_v54  ;;  %v1390_v31 = vmul.f32 %v1386_v27, %v1333_v58  ;;  %v1391_v32 = vmul.f32 %v1386_v27, %v1346_v59 }
 0x63f   :  { %v1395_v33 = vpop.permute.xlu1 %1394 }
 0x640   :  { %v1397_v23 = vadd.f32 %v1395_v33, %v1388_v29  ;;  %v1398_v34 = vadd.f32 %v1395_v33, %v1389_v30  ;;  %v1399_v35 = vadd.f32 %v1395_v33, %v1390_v31  ;;  %v1400_v47 = vadd.f32 %v1395_v33, %v1391_v32 }
 0x642   :  { %v1401_v61 = vmax.f32 %v1397_v23, 0.0  ;;  %v1402_v49 = vmax.f32 %v1398_v34, 0.0  ;;  %v1403_v37 = vmax.f32 %v1399_v35, 0.0  ;;  %v1404_v38 = vmax.f32 %v1400_v47, 0.0 }
 0x644   :  { %1405 = vst [vmem:[#allocation9] sm:$0xff] %v1401_v61 }
 0x645   :  { %1406 = vst [vmem:[#allocation9 + $0x8] sm:$0xff] %v1402_v49 }
 0x646   :  { %1407 = vst [vmem:[#allocation9 + $0x10] sm:$0xff] %v1403_v37 }
 0x647   :  { %1408 = vst [vmem:[#allocation9 + $0x18] sm:$0xff] %v1404_v38 }
 0x648   :  { %1421 = dma.vmem_to_hbm [thread:$0]  %s1414_s1, 512, %s1416_s8, [#allocation8], %s1795_s14, %s1795_s14, %s1796_s15  }
 0x649   :  { %1792 = dma.done.wait [#allocation8], 512  }
 0x64a   :  { %1793 = vsyncadd [#allocation8], 4294966784 }
 0x64b   :  { %1426 = vsyncpa [#allocation7], 1 }
 0x64c   :  { %1427 = vsyncpa [#allocation8], 1 }

</bundles_post_ra>
